<compile_context>
chip_gen: v5e
topology: v5e:2x2
jax: 0.10.0
libtpu: 0.0.40
codegen_flags: <defaults>
</compile_context>

<pallas_src>
import functools

import jax
import jax.numpy as jnp
from jax.experimental import pallas as pl
from jax.experimental.pallas import tpu as pltpu

LN_EPS = 1e-5            # nn.LayerNorm default eps
SOFTPLUS_THRESH = 20.0   # nn.Softplus default threshold (beta=1)
HIDDEN = 512


def _round_up(x, m):
    return ((x + m - 1) // m) * m


def _cdiv(a, b):
    return -(-a // b)


def _ln_relu(h, gamma, beta):
    """LayerNorm (two-pass, biased variance) -> affine -> ReLU, all f32."""
    mean = jnp.mean(h, axis=-1, keepdims=True)
    c = h - mean
    var = jnp.mean(c * c, axis=-1, keepdims=True)
    hn = c * jax.lax.rsqrt(var + LN_EPS)
    return jnp.maximum(hn * gamma + beta, 0.0)


def _softplus(x):
    return jnp.where(x > SOFTPLUS_THRESH, x,
                     jnp.log1p(jnp.exp(jnp.minimum(x, SOFTPLUS_THRESH))))


def _a2c_kernel(obs_ref,
                wb_ref,        # (n_obs, 512) bf16   body weight
                w1h_ref,       # (512, 1024) bf16    fused [mu | var] hidden weight
                p512_ref,      # (5, 512) f32: bb, gamma_b, beta_b, w2_mu, w2_var
                p1024_ref,     # (3, 1024) f32: b1h, gamma1h, beta1h
                b2_ref,        # (2,) f32 in SMEM: output biases (mu, var)
                out_ref):      # (TB, 2) f32: col0 = tanh(mu), col1 = softplus(var)
    H = HIDDEN
    p512 = p512_ref[...]
    p1024 = p1024_ref[...]
    bb, gb, betab = p512[0:1, :], p512[1:2, :], p512[2:3, :]
    w2m, w2v = p512[3:4, :], p512[4:5, :]
    b1h, g1h, beta1h = p1024[0:1, :], p1024[1:2, :], p1024[2:3, :]

    # body: Linear -> LN -> ReLU (bf16 MXU matmul, f32 accumulate / LN)
    x = obs_ref[...].astype(jnp.bfloat16)
    hb = jnp.dot(x, wb_ref[...], preferred_element_type=jnp.float32) + bb
    body = _ln_relu(hb, gb, betab)                                    # (TB, 512) f32

    # fused head hidden layers: one (TB,512) @ (512,1024) matmul
    hh = jnp.dot(body.astype(jnp.bfloat16), w1h_ref[...],
                 preferred_element_type=jnp.float32) + b1h            # (TB, 1024) f32
    h_mu = _ln_relu(hh[:, :H], g1h[:, :H], beta1h[:, :H])             # (TB, 512)
    h_v = _ln_relu(hh[:, H:], g1h[:, H:], beta1h[:, H:])              # (TB, 512)

    # skinny (512 -> 1) projections on VPU/XLU lane reduce (MXU skipped)
    mu_raw = jnp.sum(h_mu * w2m, axis=-1, keepdims=True) + b2_ref[0]  # (TB, 1)
    v_raw = jnp.sum(h_v * w2v, axis=-1, keepdims=True) + b2_ref[1]    # (TB, 1)

    out_ref[:, 0:1] = jnp.tanh(mu_raw)
    out_ref[:, 1:2] = _softplus(v_raw)


def _tile_plan(B, tb):
    """Balanced batch tiles: minimal padding, >=2 tiles when worth it (v7x megacore)."""
    min_tiles = 2 if B > 8 else 1
    num_tiles = max(_cdiv(B, tb), min_tiles)
    TB = _round_up(_cdiv(B, num_tiles), 8)
    num_tiles = _cdiv(B, TB)          # TB rounding can reduce the tile count
    return TB, num_tiles, TB * num_tiles


@functools.partial(jax.jit, static_argnames=("tb",))
def continuous_a2c_forward(obs, params, tb=512):
    """obs: (B, n_obs) f32.  params: (wb, w1h, p512, p1024, b2).  Returns (mu, var)."""
    B, n_obs = obs.shape
    wb, w1h, p512, p1024, b2 = params

    TB, num_tiles, B_pad = _tile_plan(B, tb)
    if B_pad != B:
        obs = jnp.pad(obs, ((0, B_pad - B), (0, 0)))

    # resident weights: full-array block, constant index, single pipeline buffer
    def resident(p):
        return pl.BlockSpec(p.shape, lambda i: (0, 0),
                            pipeline_mode=pl.Buffered(1))

    in_specs = [
        pl.BlockSpec((TB, n_obs), lambda i: (i, 0)),
        resident(wb), resident(w1h), resident(p512), resident(p1024),
        pl.BlockSpec(memory_space=pltpu.MemorySpace.SMEM),
    ]

    flops = 2 * B_pad * (n_obs * HIDDEN + HIDDEN * 2 * HIDDEN + 2 * HIDDEN)
    bytes_accessed = (obs.size * 4 + wb.size * 2 + w1h.size * 2
                      + p512.size * 4 + p1024.size * 4 + b2.size * 4
                      + B_pad * 2 * 4)
    cost = pl.CostEstimate(flops=flops,
                           transcendentals=5 * B_pad,   # 3 rsqrt + tanh + exp per row
                           bytes_accessed=bytes_accessed)

    out = pl.pallas_call(
        _a2c_kernel,
        out_shape=jax.ShapeDtypeStruct((B_pad, 2), jnp.float32),
        grid=(num_tiles,),
        in_specs=in_specs,
        out_specs=pl.BlockSpec((TB, 2), lambda i: (i, 0)),
        compiler_params=pltpu.CompilerParams(
            dimension_semantics=("parallel",),
            vmem_limit_bytes=32 * 1024 * 1024),   # safe on v5e/v6e/v7x; ~8 MiB used at TB=512
        cost_estimate=cost,
    )(obs, wb, w1h, p512, p1024, b2)

    return out[:B, 0:1], out[:B, 1:2]


# ----------------------------------------------------------------------------- params


def _init_linear(key, n_in, n_out):
    """PyTorch-style nn.Linear init: U(-1/sqrt(n_in), 1/sqrt(n_in))."""
    kw, kb = jax.random.split(key)
    bound = 1.0 / jnp.sqrt(float(n_in))
    w = jax.random.uniform(kw, (n_in, n_out), jnp.float32, -bound, bound)
    b = jax.random.uniform(kb, (1, n_out), jnp.float32, -bound, bound)
    return w, b


def _init_params(key, n_obs, hidden=HIDDEN):
    keys = jax.random.split(key, 5)
    # body
    wb, bb = _init_linear(keys[0], n_obs, hidden)
    gb = jnp.ones((1, hidden), jnp.float32)
    betab = jnp.zeros((1, hidden), jnp.float32)
    # head hidden layers, fused along output dim: [mu | var]
    wm1, bm1 = _init_linear(keys[1], hidden, hidden)
    wv1, bv1 = _init_linear(keys[3], hidden, hidden)
    w1h = jnp.concatenate([wm1, wv1], axis=1)                 # (512, 1024)
    b1h = jnp.concatenate([bm1, bv1], axis=1)                 # (1, 1024)
    g1h = jnp.ones((1, 2 * hidden), jnp.float32)
    beta1h = jnp.zeros((1, 2 * hidden), jnp.float32)
    # output projections (rows for the VPU reduce) + output biases
    wm2, bm2 = _init_linear(keys[2], hidden, 1)
    wv2, bv2 = _init_linear(keys[4], hidden, 1)

    p512 = jnp.concatenate([bb, gb, betab, wm2.T, wv2.T], axis=0).astype(jnp.float32)
    p1024 = jnp.concatenate([b1h, g1h, beta1h], axis=0).astype(jnp.float32)
    b2 = jnp.concatenate([bm2.reshape(1), bv2.reshape(1)]).astype(jnp.float32)  # (2,)

    # matmul weights in bf16 (halves resident VMEM; MXU-native rate)
    return (wb.astype(jnp.bfloat16), w1h.astype(jnp.bfloat16), p512, p1024, b2)


# ----------------------------------------------------------------------------- reference


def _reference_forward(obs, params):
    """Pure-JAX reference mirroring the kernel math (bf16 matmuls, f32 elsewhere)."""
    wb, w1h, p512, p1024, b2 = params
    H = HIDDEN
    bb, gb, betab = p512[0:1, :], p512[1:2, :], p512[2:3, :]
    w2m, w2v = p512[3:4, :], p512[4:5, :]
    b1h, g1h, beta1h = p1024[0:1, :], p1024[1:2, :], p1024[2:3, :]

    hb = jnp.dot(obs.astype(jnp.bfloat16), wb, preferred_element_type=jnp.float32) + bb
    body = _ln_relu(hb, gb, betab)
    hh = jnp.dot(body.astype(jnp.bfloat16), w1h, preferred_element_type=jnp.float32) + b1h
    h_mu = _ln_relu(hh[:, :H], g1h[:, :H], beta1h[:, :H])
    h_v = _ln_relu(hh[:, H:], g1h[:, H:], beta1h[:, H:])
    mu = jnp.tanh(jnp.sum(h_mu * w2m, axis=-1, keepdims=True) + b2[0])
    var = jax.nn.softplus(jnp.sum(h_v * w2v, axis=-1, keepdims=True) + b2[1])
    return mu, var


# TODO(synk): critic head / MSELoss / Adam optimizer are training machinery and are
# intentionally not part of this forward-pass kernel.

if __name__ == "__main__":
    N_OBS = 32
    key = jax.random.PRNGKey(0)
    k_obs, k_param, k_obs2 = jax.random.split(key, 3)
    params = _init_params(k_param, N_OBS)

    # small batch (single tile)
    B = 8
    obs = jax.random.normal(k_obs, (B, N_OBS), dtype=jnp.float32)
    mu, var = jax.block_until_ready(continuous_a2c_forward(obs, params))
    mu_ref, var_ref = _reference_forward(obs, params)
    assert mu.shape == (B, 1) and var.shape == (B, 1)
    assert bool(jnp.all(var >= 0.0))
    assert jnp.allclose(mu, mu_ref, atol=5e-3, rtol=5e-3)
    assert jnp.allclose(var, var_ref, atol=5e-3, rtol=5e-3)

    # ragged batch (exercises balanced tiling + padding + 2-tile grid)
    B2 = 37
    obs2 = jax.random.normal(k_obs2, (B2, N_OBS), dtype=jnp.float32)
    mu2, var2 = jax.block_until_ready(continuous_a2c_forward(obs2, params))
    mu2_ref, var2_ref = _reference_forward(obs2, params)
    assert mu2.shape == (B2, 1) and var2.shape == (B2, 1)
    assert bool(jnp.all(var2 >= 0.0))
    assert jnp.allclose(mu2, mu2_ref, atol=5e-3, rtol=5e-3)
    assert jnp.allclose(var2, var2_ref, atol=5e-3, rtol=5e-3)

    print("KERNEL_OK")
</pallas_src>

<mosaic_0001>
module attributes {stable_mosaic.version = 11 : i64} {
  func.func @_a2c_kernel(%arg0: i32, %arg1: memref<8x32xf32, #tpu.memory_space<vmem>>, %arg2: memref<32x512xbf16, #tpu.memory_space<vmem>>, %arg3: memref<512x1024xbf16, #tpu.memory_space<vmem>>, %arg4: memref<5x512xf32, #tpu.memory_space<vmem>>, %arg5: memref<3x1024xf32, #tpu.memory_space<vmem>>, %arg6: memref<2xf32, #tpu.memory_space<smem>>, %arg7: memref<8x2xf32, #tpu.memory_space<vmem>>) attributes {dimension_semantics = [#tpu.dimension_semantics<parallel>], iteration_bounds = array<i64: 1>, scalar_prefetch = 0 : i64, scratch_operands = 0 : i64, tpu.core_type = #tpu.core_type<tc>, window_params = [{transform_indices = @transform_0, window_bounds = array<i64: 8, 32>}, {pipeline_mode = #tpu.pipeline_mode<synchronous>, transform_indices = @transform_1, window_bounds = array<i64: 32, 512>}, {pipeline_mode = #tpu.pipeline_mode<synchronous>, transform_indices = @transform_2, window_bounds = array<i64: 512, 1024>}, {pipeline_mode = #tpu.pipeline_mode<synchronous>, transform_indices = @transform_3, window_bounds = array<i64: 5, 512>}, {pipeline_mode = #tpu.pipeline_mode<synchronous>, transform_indices = @transform_4, window_bounds = array<i64: 3, 1024>}, {transform_indices = @transform_5, window_bounds = array<i64: 2>}, {transform_indices = @transform_6, window_bounds = array<i64: 8, 2>}]} {
    %c0 = arith.constant 0 : index
    %c0_0 = arith.constant 0 : index
    %0 = vector.load %arg4[%c0, %c0_0] : memref<5x512xf32, #tpu.memory_space<vmem>>, vector<5x512xf32>
    %c0_1 = arith.constant 0 : index
    %c0_2 = arith.constant 0 : index
    %1 = vector.load %arg5[%c0_1, %c0_2] : memref<3x1024xf32, #tpu.memory_space<vmem>>, vector<3x1024xf32>
    %2 = vector.extract_strided_slice %0 {offsets = [0, 0], sizes = [1, 512], strides = [1, 1]} : vector<5x512xf32> to vector<1x512xf32>
    %3 = vector.extract_strided_slice %0 {offsets = [1, 0], sizes = [1, 512], strides = [1, 1]} : vector<5x512xf32> to vector<1x512xf32>
    %4 = vector.extract_strided_slice %0 {offsets = [2, 0], sizes = [1, 512], strides = [1, 1]} : vector<5x512xf32> to vector<1x512xf32>
    %5 = vector.extract_strided_slice %0 {offsets = [3, 0], sizes = [1, 512], strides = [1, 1]} : vector<5x512xf32> to vector<1x512xf32>
    %6 = vector.extract_strided_slice %0 {offsets = [4, 0], sizes = [1, 512], strides = [1, 1]} : vector<5x512xf32> to vector<1x512xf32>
    %7 = vector.extract_strided_slice %1 {offsets = [0, 0], sizes = [1, 1024], strides = [1, 1]} : vector<3x1024xf32> to vector<1x1024xf32>
    %8 = vector.extract_strided_slice %1 {offsets = [1, 0], sizes = [1, 1024], strides = [1, 1]} : vector<3x1024xf32> to vector<1x1024xf32>
    %9 = vector.extract_strided_slice %1 {offsets = [2, 0], sizes = [1, 1024], strides = [1, 1]} : vector<3x1024xf32> to vector<1x1024xf32>
    %c0_3 = arith.constant 0 : index
    %c0_4 = arith.constant 0 : index
    %10 = vector.load %arg1[%c0_3, %c0_4] : memref<8x32xf32, #tpu.memory_space<vmem>>, vector<8x32xf32>
    %11 = arith.truncf %10 : vector<8x32xf32> to vector<8x32xbf16>
    %c0_5 = arith.constant 0 : index
    %c0_6 = arith.constant 0 : index
    %12 = vector.load %arg2[%c0_5, %c0_6] : memref<32x512xbf16, #tpu.memory_space<vmem>>, vector<32x512xbf16>
    %cst = arith.constant dense<0.000000e+00> : vector<8x512xf32>
    %13 = tpu.matmul %11, %12, %cst {dimension_numbers = #tpu.dot_dimension_numbers<[1], [0], [0], [1], [0, 0, 1, 1], [], []>} : vector<8x32xbf16>, vector<32x512xbf16>, vector<8x512xf32> -> vector<8x512xf32>
    %14 = vector.broadcast %2 : vector<1x512xf32> to vector<8x512xf32>
    %15 = arith.addf %13, %14 : vector<8x512xf32>
    %cst_7 = arith.constant dense<0.000000e+00> : vector<8xf32>
    %16 = vector.multi_reduction <add>, %15, %cst_7 [1] : vector<8x512xf32> to vector<8xf32>
    %17 = vector.shape_cast %16 : vector<8xf32> to vector<8x1xf32>
    %cst_8 = arith.constant 5.120000e+02 : f32
    %18 = vector.broadcast %cst_8 : f32 to vector<8x1xf32>
    %19 = arith.divf %17, %18 : vector<8x1xf32>
    %20 = vector.broadcast %19 : vector<8x1xf32> to vector<8x512xf32>
    %21 = arith.subf %15, %20 : vector<8x512xf32>
    %22 = arith.mulf %21, %21 : vector<8x512xf32>
    %cst_9 = arith.constant dense<0.000000e+00> : vector<8xf32>
    %23 = vector.multi_reduction <add>, %22, %cst_9 [1] : vector<8x512xf32> to vector<8xf32>
    %24 = vector.shape_cast %23 : vector<8xf32> to vector<8x1xf32>
    %cst_10 = arith.constant 5.120000e+02 : f32
    %25 = vector.broadcast %cst_10 : f32 to vector<8x1xf32>
    %26 = arith.divf %24, %25 : vector<8x1xf32>
    %cst_11 = arith.constant 9.99999974E-6 : f32
    %27 = vector.broadcast %cst_11 : f32 to vector<8x1xf32>
    %28 = arith.addf %26, %27 : vector<8x1xf32>
    %29 = math.rsqrt %28 : vector<8x1xf32>
    %30 = vector.broadcast %29 : vector<8x1xf32> to vector<8x512xf32>
    %31 = arith.mulf %21, %30 : vector<8x512xf32>
    %32 = vector.broadcast %3 : vector<1x512xf32> to vector<8x512xf32>
    %33 = arith.mulf %31, %32 : vector<8x512xf32>
    %34 = vector.broadcast %4 : vector<1x512xf32> to vector<8x512xf32>
    %35 = arith.addf %33, %34 : vector<8x512xf32>
    %cst_12 = arith.constant 0.000000e+00 : f32
    %36 = vector.broadcast %cst_12 : f32 to vector<8x512xf32>
    %37 = arith.maximumf %35, %36 : vector<8x512xf32>
    %38 = arith.truncf %37 : vector<8x512xf32> to vector<8x512xbf16>
    %c0_13 = arith.constant 0 : index
    %c0_14 = arith.constant 0 : index
    %39 = vector.load %arg3[%c0_13, %c0_14] : memref<512x1024xbf16, #tpu.memory_space<vmem>>, vector<512x1024xbf16>
    %cst_15 = arith.constant dense<0.000000e+00> : vector<8x1024xf32>
    %40 = tpu.matmul %38, %39, %cst_15 {dimension_numbers = #tpu.dot_dimension_numbers<[1], [0], [0], [1], [0, 0, 1, 1], [], []>} : vector<8x512xbf16>, vector<512x1024xbf16>, vector<8x1024xf32> -> vector<8x1024xf32>
    %41 = vector.broadcast %7 : vector<1x1024xf32> to vector<8x1024xf32>
    %42 = arith.addf %40, %41 : vector<8x1024xf32>
    %43 = vector.extract_strided_slice %42 {offsets = [0, 0], sizes = [8, 512], strides = [1, 1]} : vector<8x1024xf32> to vector<8x512xf32>
    %44 = vector.extract_strided_slice %8 {offsets = [0, 0], sizes = [1, 512], strides = [1, 1]} : vector<1x1024xf32> to vector<1x512xf32>
    %45 = vector.extract_strided_slice %9 {offsets = [0, 0], sizes = [1, 512], strides = [1, 1]} : vector<1x1024xf32> to vector<1x512xf32>
    %cst_16 = arith.constant dense<0.000000e+00> : vector<8xf32>
    %46 = vector.multi_reduction <add>, %43, %cst_16 [1] : vector<8x512xf32> to vector<8xf32>
    %47 = vector.shape_cast %46 : vector<8xf32> to vector<8x1xf32>
    %cst_17 = arith.constant 5.120000e+02 : f32
    %48 = vector.broadcast %cst_17 : f32 to vector<8x1xf32>
    %49 = arith.divf %47, %48 : vector<8x1xf32>
    %50 = vector.broadcast %49 : vector<8x1xf32> to vector<8x512xf32>
    %51 = arith.subf %43, %50 : vector<8x512xf32>
    %52 = arith.mulf %51, %51 : vector<8x512xf32>
    %cst_18 = arith.constant dense<0.000000e+00> : vector<8xf32>
    %53 = vector.multi_reduction <add>, %52, %cst_18 [1] : vector<8x512xf32> to vector<8xf32>
    %54 = vector.shape_cast %53 : vector<8xf32> to vector<8x1xf32>
    %cst_19 = arith.constant 5.120000e+02 : f32
    %55 = vector.broadcast %cst_19 : f32 to vector<8x1xf32>
    %56 = arith.divf %54, %55 : vector<8x1xf32>
    %cst_20 = arith.constant 9.99999974E-6 : f32
    %57 = vector.broadcast %cst_20 : f32 to vector<8x1xf32>
    %58 = arith.addf %56, %57 : vector<8x1xf32>
    %59 = math.rsqrt %58 : vector<8x1xf32>
    %60 = vector.broadcast %59 : vector<8x1xf32> to vector<8x512xf32>
    %61 = arith.mulf %51, %60 : vector<8x512xf32>
    %62 = vector.broadcast %44 : vector<1x512xf32> to vector<8x512xf32>
    %63 = arith.mulf %61, %62 : vector<8x512xf32>
    %64 = vector.broadcast %45 : vector<1x512xf32> to vector<8x512xf32>
    %65 = arith.addf %63, %64 : vector<8x512xf32>
    %cst_21 = arith.constant 0.000000e+00 : f32
    %66 = vector.broadcast %cst_21 : f32 to vector<8x512xf32>
    %67 = arith.maximumf %65, %66 : vector<8x512xf32>
    %68 = vector.extract_strided_slice %42 {offsets = [0, 512], sizes = [8, 512], strides = [1, 1]} : vector<8x1024xf32> to vector<8x512xf32>
    %69 = vector.extract_strided_slice %8 {offsets = [0, 512], sizes = [1, 512], strides = [1, 1]} : vector<1x1024xf32> to vector<1x512xf32>
    %70 = vector.extract_strided_slice %9 {offsets = [0, 512], sizes = [1, 512], strides = [1, 1]} : vector<1x1024xf32> to vector<1x512xf32>
    %cst_22 = arith.constant dense<0.000000e+00> : vector<8xf32>
    %71 = vector.multi_reduction <add>, %68, %cst_22 [1] : vector<8x512xf32> to vector<8xf32>
    %72 = vector.shape_cast %71 : vector<8xf32> to vector<8x1xf32>
    %cst_23 = arith.constant 5.120000e+02 : f32
    %73 = vector.broadcast %cst_23 : f32 to vector<8x1xf32>
    %74 = arith.divf %72, %73 : vector<8x1xf32>
    %75 = vector.broadcast %74 : vector<8x1xf32> to vector<8x512xf32>
    %76 = arith.subf %68, %75 : vector<8x512xf32>
    %77 = arith.mulf %76, %76 : vector<8x512xf32>
    %cst_24 = arith.constant dense<0.000000e+00> : vector<8xf32>
    %78 = vector.multi_reduction <add>, %77, %cst_24 [1] : vector<8x512xf32> to vector<8xf32>
    %79 = vector.shape_cast %78 : vector<8xf32> to vector<8x1xf32>
    %cst_25 = arith.constant 5.120000e+02 : f32
    %80 = vector.broadcast %cst_25 : f32 to vector<8x1xf32>
    %81 = arith.divf %79, %80 : vector<8x1xf32>
    %cst_26 = arith.constant 9.99999974E-6 : f32
    %82 = vector.broadcast %cst_26 : f32 to vector<8x1xf32>
    %83 = arith.addf %81, %82 : vector<8x1xf32>
    %84 = math.rsqrt %83 : vector<8x1xf32>
    %85 = vector.broadcast %84 : vector<8x1xf32> to vector<8x512xf32>
    %86 = arith.mulf %76, %85 : vector<8x512xf32>
    %87 = vector.broadcast %69 : vector<1x512xf32> to vector<8x512xf32>
    %88 = arith.mulf %86, %87 : vector<8x512xf32>
    %89 = vector.broadcast %70 : vector<1x512xf32> to vector<8x512xf32>
    %90 = arith.addf %88, %89 : vector<8x512xf32>
    %cst_27 = arith.constant 0.000000e+00 : f32
    %91 = vector.broadcast %cst_27 : f32 to vector<8x512xf32>
    %92 = arith.maximumf %90, %91 : vector<8x512xf32>
    %93 = vector.broadcast %5 : vector<1x512xf32> to vector<8x512xf32>
    %94 = arith.mulf %67, %93 : vector<8x512xf32>
    %cst_28 = arith.constant dense<0.000000e+00> : vector<8xf32>
    %95 = vector.multi_reduction <add>, %94, %cst_28 [1] : vector<8x512xf32> to vector<8xf32>
    %96 = vector.shape_cast %95 : vector<8xf32> to vector<8x1xf32>
    %c0_29 = arith.constant 0 : index
    %97 = memref.load %arg6[%c0_29] : memref<2xf32, #tpu.memory_space<smem>>
    %98 = vector.broadcast %97 : f32 to vector<8x1xf32>
    %99 = arith.addf %96, %98 : vector<8x1xf32>
    %100 = vector.broadcast %6 : vector<1x512xf32> to vector<8x512xf32>
    %101 = arith.mulf %92, %100 : vector<8x512xf32>
    %cst_30 = arith.constant dense<0.000000e+00> : vector<8xf32>
    %102 = vector.multi_reduction <add>, %101, %cst_30 [1] : vector<8x512xf32> to vector<8xf32>
    %103 = vector.shape_cast %102 : vector<8xf32> to vector<8x1xf32>
    %c1 = arith.constant 1 : index
    %104 = memref.load %arg6[%c1] : memref<2xf32, #tpu.memory_space<smem>>
    %105 = vector.broadcast %104 : f32 to vector<8x1xf32>
    %106 = arith.addf %103, %105 : vector<8x1xf32>
    %107 = math.tanh %99 : vector<8x1xf32>
    %c0_31 = arith.constant 0 : index
    %c0_32 = arith.constant 0 : index
    %108 = vector.load %arg7[%c0_31, %c0_32] : memref<8x2xf32, #tpu.memory_space<vmem>>, vector<8x1xf32>
    tpu.vector_store %arg7[%c0_31, %c0_32], %107 {strides = array<i32>} : memref<8x2xf32, #tpu.memory_space<vmem>>, vector<8x1xf32>,
    %cst_33 = arith.constant 2.000000e+01 : f32
    %109 = vector.broadcast %cst_33 : f32 to vector<8x1xf32>
    %110 = arith.cmpf ogt, %106, %109 : vector<8x1xf32>
    %cst_34 = arith.constant 2.000000e+01 : f32
    %111 = vector.broadcast %cst_34 : f32 to vector<8x1xf32>
    %112 = arith.minimumf %106, %111 : vector<8x1xf32>
    %113 = math.exp %112 : vector<8x1xf32>
    %114 = math.log1p %113 : vector<8x1xf32>
    %115 = arith.select %110, %106, %114 : vector<8x1xi1>, vector<8x1xf32>
    %c0_35 = arith.constant 0 : index
    %c1_36 = arith.constant 1 : index
    %116 = vector.load %arg7[%c0_35, %c1_36] : memref<8x2xf32, #tpu.memory_space<vmem>>, vector<8x1xf32>
    tpu.vector_store %arg7[%c0_35, %c1_36], %115 {strides = array<i32>} : memref<8x2xf32, #tpu.memory_space<vmem>>, vector<8x1xf32>,
    return
  }
  func.func @transform_0(%arg0: i32) -> (i32, i32) {
    %c0_i32 = arith.constant 0 : i32
    %c0_i32_0 = arith.constant 0 : i32
    return %arg0, %c0_i32 : i32, i32
  }
  func.func @transform_1(%arg0: i32) -> (i32, i32) {
    %c0_i32 = arith.constant 0 : i32
    %c0_i32_0 = arith.constant 0 : i32
    %c0_i32_1 = arith.constant 0 : i32
    return %c0_i32, %c0_i32_0 : i32, i32
  }
  func.func @transform_2(%arg0: i32) -> (i32, i32) {
    %c0_i32 = arith.constant 0 : i32
    %c0_i32_0 = arith.constant 0 : i32
    %c0_i32_1 = arith.constant 0 : i32
    return %c0_i32, %c0_i32_0 : i32, i32
  }
  func.func @transform_3(%arg0: i32) -> (i32, i32) {
    %c0_i32 = arith.constant 0 : i32
    %c0_i32_0 = arith.constant 0 : i32
    %c0_i32_1 = arith.constant 0 : i32
    return %c0_i32, %c0_i32_0 : i32, i32
  }
  func.func @transform_4(%arg0: i32) -> (i32, i32) {
    %c0_i32 = arith.constant 0 : i32
    %c0_i32_0 = arith.constant 0 : i32
    %c0_i32_1 = arith.constant 0 : i32
    return %c0_i32, %c0_i32_0 : i32, i32
  }
  func.func @transform_5(%arg0: i32) -> i32 {
    %c0_i32 = arith.constant 0 : i32
    %c0_i32_0 = arith.constant 0 : i32
    return %c0_i32 : i32
  }
  func.func @transform_6(%arg0: i32) -> (i32, i32) {
    %c0_i32 = arith.constant 0 : i32
    %c0_i32_0 = arith.constant 0 : i32
    return %arg0, %c0_i32 : i32, i32
  }
}

</mosaic_0001>

<bundles_post_ra>
// kernel: continuous_a2c_forward.1
= control target key start
LH: loop header
LB: loop body
LE: loop exit
PB: predicated region body
PF: predicated region fallthrough
CT: control target
= control target key end

     0   :  { %11 = vsyncpa [#allocation3], 0  ;;  %s4258_s0 = inlined_call_operand.hbm [shape: f32[8,32], index: 0, kind: input, shape index: {}]   ;;  %s4259_s1 = inlined_call_operand.hbm [shape: bf16[32,512], index: 1, kind: input, shape index: {}]   ;;  %s4260_s2 = inlined_call_operand.hbm [shape: bf16[512,1024], index: 2, kind: input, shape index: {}]   ;;  %s4261_s3 = inlined_call_operand.hbm [shape: f32[5,512], index: 3, kind: input, shape index: {}]   ;;  %s4262_s4 = inlined_call_operand.hbm [shape: f32[3,1024], index: 4, kind: input, shape index: {}]   ;;  %s4263_s5 = inlined_call_operand.vmem [shape: f32[2], index: 5, kind: input, shape index: {}]   ;;  %s4264_s6 = inlined_call_operand.vmem [shape: f32[8,2], index: 6, kind: output, shape index: {}]  }
   0x1   :  { %12 = vsyncpa [#allocation6], 0 }
   0x2   :  { %13 = vsyncpa [#allocation9], 0  ;;  %s30_s23 = sshll.u32 %s4259_s1, 4  ;;  %s31_s23 = int_to_ptr.hbm [resolvable:$true] %s30_s23 }
   0x3   :  { %14 = vsyncpa [#allocation4], 0  ;;  %s3968_s24 = smov [#allocation5]   ;;  %s57_s28 = sshll.u32 %s4261_s3, 4  ;;  %s58_s28 = int_to_ptr.hbm [resolvable:$true] %s57_s28 }
   0x4   :  { %s32_s25 = sshll.u32 %s3968_s24, 4  ;;  %s3969_s29 = smov 256   ;;  %s33_s25 = int_to_ptr.vmem [resolvable:$true] %s32_s25 }
   0x5   :  { %s3970_s30 = smov 16   ;;  %s3971_s7 = smov [#allocation8]  }
   0x6   :  { %38 = dma.hbm_to_vmem [thread:$0]  %s31_s23, 1024, %s33_s25, [#allocation6], %s3969_s29, %s3969_s29, %s3970_s30  }
   0x7   :  { %s59_s8 = sshll.u32 %s3971_s7, 4  ;;  %s20_s11 = sshll.u32 %s4258_s0, 4  ;;  %s60_s8 = int_to_ptr.vmem [resolvable:$true] %s59_s8  ;;  %s21_s11 = int_to_ptr.hbm [resolvable:$true] %s20_s11 }
   0x8   :  { %62 = dma.hbm_to_vmem [thread:$0]  %s58_s28, 512, %s60_s8, [#allocation9]  }
   0x9   :  { %s43_s13 = sshll.u32 %s4260_s2, 4  ;;  %s3972_s14 = smov [#allocation2]   ;;  %s44_s13 = int_to_ptr.hbm [resolvable:$true] %s43_s13 }
   0xa   :  { %s22_s15 = sshll.u32 %s3972_s14, 4  ;;  %s3973_s3 = smov [#allocation7]   ;;  %s23_s15 = int_to_ptr.vmem [resolvable:$true] %s22_s15 }
   0xb   :  { %25 = dma.hbm_to_vmem [thread:$0]  %s21_s11, 128, %s23_s15, [#allocation3]  }
   0xc   :  { %s45_s16 = sshll.u32 %s3973_s3, 4  ;;  %s3974_s17 = smov 512   ;;  %s46_s16 = int_to_ptr.vmem [resolvable:$true] %s45_s16 }
   0xd   :  { %s3975_s18 = smov 32   ;;  %s68_s20 = sshll.u32 %s4262_s4, 4  ;;  %s69_s20 = int_to_ptr.hbm [resolvable:$true] %s68_s20 }
   0xe   :  { %51 = dma.hbm_to_vmem [thread:$0]  %s44_s13, 32768, %s46_s16, [#allocation6], %s3974_s17, %s3974_s17, %s3975_s18  }
   0xf   :  { %s3976_s21 = smov [#allocation10]   ;;  %s79_s24 = sshll.u32 %s4263_s5, 4  ;;  %s80_s24 = int_to_ptr.vmem [resolvable:$true] %s79_s24 }
  0x10   :  { %s70_s22 = sshll.u32 %s3976_s21, 4  ;;  %s3977_s25 = smov [#allocation11]   ;;  %s71_s22 = int_to_ptr.vmem [resolvable:$true] %s70_s22 }
  0x11   :  { %73 = dma.hbm_to_vmem [thread:$0]  %s69_s20, 512, %s71_s22, [#allocation9]  }
  0x12   :  { %82 = dma.vmem_to_smem %s80_s24, 16, %s3977_s25, [#allocation4]  }
  0x13   :  { %3960 = dma.done.wait [#allocation3], 128  }
  0x14   :  { %3961 = vsyncadd [#allocation3], 4294967168 }
  0x15   :  { %3962 = dma.done.wait [#allocation6], 33792  }
  0x16   :  { %3963 = vsyncadd [#allocation6], 4294933504 }
  0x17   :  { %3964 = dma.done.wait [#allocation9], 1024  }
  0x18   :  { %3965 = vsyncadd [#allocation9], 4294966272 }
  0x19   :  { %3966 = dma.done.wait [#allocation4], 16  }
  0x1a   :  { %3967 = vsyncadd [#allocation4], 4294967280 }
  0x1b   :  { %107 = sfence }
  0x1c   :  { %v2492_v0 = vld [vmem:[#allocation5 + $0x20] sm:$0xf]  ;;  %v3541_v1 = vld [vmem:[#allocation5 + $0x2c] sm:$0xf0]  ;;  %v3539_v2 = vld [vmem:[#allocation5 + $0x24] sm:$0xf] }
  0x1d   :  { %v2493_v3 = vor.u32 %v3541_v1, %v2492_v0  ;;  %v2494_v4 = vld [vmem:[#allocation5 + $0x30] sm:$0xf0]  ;;  %v2500_v5 = vld [vmem:[#allocation5 + $0x28] sm:$0xf]  ;;  %v3542_v6 = vld [vmem:[#allocation5 + $0x34] sm:$0xf0] }
  0x1e   :  { %v2497_v7 = vor.u32 %v3539_v2, %v2494_v4  ;;  %v2501_v8 = vor.u32 %v3542_v6, %v2500_v5  ;;  %v3540_v9 = vld [vmem:[#allocation5 + $0x2c] sm:$0xf]  ;;  %v2502_v10 = vld [vmem:[#allocation5 + $0x38] sm:$0xf0]  ;;  %v2476_v11 = vld [vmem:[#allocation5] sm:$0xf] }
  0x1f   :  { %181 = vmatpush.bf16.msra.mxu0 %v2493_v3  ;;  %v2505_v12 = vor.u32 %v3540_v9, %v2502_v10  ;;  %v3537_v13 = vld [vmem:[#allocation5 + $0xc] sm:$0xf0]  ;;  %v3535_v14 = vld [vmem:[#allocation5 + $0x4] sm:$0xf]  ;;  %v2478_v15 = vld [vmem:[#allocation5 + $0x10] sm:$0xf0] }
  0x20   :  { %194 = vmatpush.bf16.msra.mxu1 %v2497_v7  ;;  %207 = vmatpush.bf16.msra.mxu2 %v2501_v8  ;;  %v2477_v16 = vor.u32 %v3537_v13, %v2476_v11  ;;  %v2481_v17 = vor.u32 %v3535_v14, %v2478_v15  ;;  %v2484_v18 = vld [vmem:[#allocation5 + $0x8] sm:$0xf]  ;;  %v3538_v19 = vld [vmem:[#allocation5 + $0x14] sm:$0xf0]  ;;  %v3536_v20 = vld [vmem:[#allocation5 + $0xc] sm:$0xf] }
  0x21   :  { %220 = vmatpush.bf16.msra.mxu3 %v2505_v12  ;;  %v2485_v21 = vor.u32 %v3538_v19, %v2484_v18  ;;  %v2486_v22 = vld [vmem:[#allocation5 + $0x18] sm:$0xf0]  ;;  %vm171_vm0 = vcmask 261120   ;;  %v4032_v26 = vld [vmem:[#allocation8] sm:$0x1f]  ;;  %v3978_v49 = vmov 512.0  }
  0x22   :  { %v117_v23 = vld [vmem:[#allocation2] sm:$0xff]  ;;  %v2489_v24 = vor.u32 %v3536_v20, %v2486_v22  ;;  %v4034_v27 = vld [vmem:[#allocation8 + $0x8] sm:$0x1f]  ;;  %v127_v28 = vperm.slane %v4032_v26, 0  ;;  %v4038_v32 = vld [vmem:[#allocation8 + $0x10] sm:$0x1f]  ;;  %3810 = vrcp.f32 %v3978_v49 }
  0x23   :  { %v118_v25 = vpack.c.bf16 %v117_v23, %v117_v23  ;;  %182 = vmatpush.bf16.msra.mxu0 %v2477_v16  ;;  %v128_v29 = vperm.slane %v4034_v27, 0  ;;  %v4044_v35 = vld [vmem:[#allocation8 + $0x18] sm:$0x1f]  ;;  %v129_v36 = vperm.slane %v4038_v32, 0  ;;  %v2736_v53 = vld [vmem:[#allocation7 + $0x1c0] sm:$0xf] }
  0x24   :  { %195 = vmatpush.bf16.msra.mxu1 %v2481_v17  ;;  %208 = vmatpush.bf16.msra.mxu2 %v2485_v21  ;;  %v130_v37 = vperm.slane %v4044_v35, 0  ;;  %v3603_v54 = vld [vmem:[#allocation7 + $0x1dc] sm:$0xf0]  ;;  %s3534_s4 = sld [smem:[#allocation11 + $0x1]]  ;;  %vm2448_vm11 = vcmask 7168   ;;  %vm2464_vm13 = vcmask 15368  }
  0x25   :  { %221 = vmatpush.bf16.msra.mxu3 %v2489_v24  ;;  %v2992_v55 = vld [vmem:[#allocation7 + $0x3c0] sm:$0xf]  ;;  %v2737_v56 = vor.u32 %v3603_v54, %v2736_v53  ;;  %s2428_s5 = sld [smem:[#allocation11]] }
  0x26   :  { %2506 = vmatmul.msk.bf16.vlgmr.msra.gmra.mxu0 %vm171_vm0, %v118_v25  ;;  %v3667_v57 = vld [vmem:[#allocation7 + $0x3dc] sm:$0xf0] }
  0x27   :  { %2507 = vmatmul.msk.bf16.vlgmr.msra.gmra.mxu1 %vm171_vm0, %v118_v25  ;;  %2508 = vmatmul.msk.bf16.vlgmr.msra.gmra.mxu2 %vm171_vm0, %v118_v25  ;;  %v3248_v58 = vld [vmem:[#allocation7 + $0x5c0] sm:$0xf]  ;;  %v2993_v60 = vor.u32 %v3667_v57, %v2992_v55 }
  0x28   :  { %2509 = vmatmul.msk.bf16.vlgmr.msra.gmra.mxu3 %vm171_vm0, %v118_v25  ;;  %v4056_v50 = vpop.eup %3810  ;;  %v3731_v59 = vld [vmem:[#allocation7 + $0x5dc] sm:$0xf0]  ;;  %1857 = vmatpush.bf16.msrb.mxu0 %v2737_v56 }
  0x29   :  { %v233_v51 = vmul.f32 512.0, %v4056_v50  ;;  %v3249_v61 = vor.u32 %v3731_v59, %v3248_v58  ;;  %v3504_v62 = vld [vmem:[#allocation7 + $0x7c0] sm:$0xf]  ;;  %1870 = vmatpush.bf16.msrb.mxu1 %v2993_v60  ;;  %vm237_vm1 = vweird.f32 %v4056_v50 }
  0x2a   :  { %v3795_v63 = vld [vmem:[#allocation7 + $0x7dc] sm:$0xf0] }
  0x2b   :  { %v234_v52 = vsub.f32 1.0, %v233_v51  ;;  %v2704_v0 = vld [vmem:[#allocation7 + $0x180] sm:$0xf]  ;;  %v3505_v1 = vor.u32 %v3795_v63, %v3504_v62  ;;  %1883 = vmatpush.bf16.msrb.mxu2 %v3249_v61 }
  0x2c   :  { %v3595_v2 = vld [vmem:[#allocation7 + $0x19c] sm:$0xf0] }
  0x2d   :  { %v2960_v3 = vld [vmem:[#allocation7 + $0x380] sm:$0xf]  ;;  %v2705_v5 = vor.u32 %v3595_v2, %v2704_v0  ;;  %1896 = vmatpush.bf16.msrb.mxu3 %v3505_v1 }
  0x2e   :  { %v3659_v4 = vld [vmem:[#allocation7 + $0x39c] sm:$0xf0] }
  0x2f   :  { %v2961_v6 = vor.u32 %v3659_v4, %v2960_v3  ;;  %v3216_v7 = vld [vmem:[#allocation7 + $0x580] sm:$0xf]  ;;  %1858 = vmatpush.bf16.msrb.mxu0 %v2705_v5 }
  0x30   :  { %v3723_v8 = vld [vmem:[#allocation7 + $0x59c] sm:$0xf0] }
  0x31   :  { %v3472_v9 = vld [vmem:[#allocation7 + $0x780] sm:$0xf]  ;;  %v3217_v10 = vor.u32 %v3723_v8, %v3216_v7  ;;  %1871 = vmatpush.bf16.msrb.mxu1 %v2961_v6 }
  0x32   :  { %v3787_v11 = vld [vmem:[#allocation7 + $0x79c] sm:$0xf0] }
  0x33   :  { %v2672_v12 = vld [vmem:[#allocation7 + $0x140] sm:$0xf]  ;;  %v3473_v14 = vor.u32 %v3787_v11, %v3472_v9  ;;  %1884 = vmatpush.bf16.msrb.mxu2 %v3217_v10 }
  0x34   :  { %v3587_v13 = vld [vmem:[#allocation7 + $0x15c] sm:$0xf0] }
  0x35   :  { %v2928_v15 = vld [vmem:[#allocation7 + $0x340] sm:$0xf]  ;;  %v2673_v18 = vor.u32 %v3587_v13, %v2672_v12  ;;  %1897 = vmatpush.bf16.msrb.mxu3 %v3473_v14 }
  0x36   :  { %v3651_v16 = vld [vmem:[#allocation7 + $0x35c] sm:$0xf0] }
  0x37   :  { %v3184_v17 = vld [vmem:[#allocation7 + $0x540] sm:$0xf]  ;;  %v2929_v22 = vor.u32 %v3651_v16, %v2928_v15  ;;  %1859 = vmatpush.bf16.msrb.mxu0 %v2673_v18 }
  0x38   :  { %v3715_v19 = vld [vmem:[#allocation7 + $0x55c] sm:$0xf0] }
  0x39   :  { %v3440_v20 = vld [vmem:[#allocation7 + $0x740] sm:$0xf]  ;;  %v3185_v23 = vor.u32 %v3715_v19, %v3184_v17  ;;  %1872 = vmatpush.bf16.msrb.mxu1 %v2929_v22 }
  0x3a   :  { %v3779_v21 = vld [vmem:[#allocation7 + $0x75c] sm:$0xf0] }
  0x3b   :  { %v2640_v24 = vld [vmem:[#allocation7 + $0x100] sm:$0xf]  ;;  %1885 = vmatpush.bf16.msrb.mxu2 %v3185_v23 }
  0x3c   :  { %v3579_v25 = vld [vmem:[#allocation7 + $0x11c] sm:$0xf0] }
  0x3d   :  { %v3635_v51 = vld [vmem:[#allocation7 + $0x2dc] sm:$0xf0] }
  0x3e   :  { %v3699_v53 = vld [vmem:[#allocation7 + $0x4dc] sm:$0xf0] }
  0x3f   :  { %v3376_v54 = vld [vmem:[#allocation7 + $0x6c0] sm:$0xf] }
  0x40   :  { %v3763_v55 = vld [vmem:[#allocation7 + $0x6dc] sm:$0xf0] }
  0x41   :  { %v2576_v59 = vld [vmem:[#allocation7 + $0x80] sm:$0xf]  ;;  %v3377_v62 = vor.u32 %v3763_v55, %v3376_v54 }
  0x42   :  { %v3563_v60 = vld [vmem:[#allocation7 + $0x9c] sm:$0xf0] }
  0x43   :  { %v2832_v63 = vld [vmem:[#allocation7 + $0x280] sm:$0xf]  ;;  %v2577_v6 = vor.u32 %v3563_v60, %v2576_v59  ;;  %v3506_v60 = vld [vmem:[#allocation7 + $0x7e0] sm:$0xf0] }
  0x44   :  { %v3627_v0 = vld [vmem:[#allocation7 + $0x29c] sm:$0xf0] }
  0x45   :  { %v3088_v1 = vld [vmem:[#allocation7 + $0x480] sm:$0xf]  ;;  %v2833_v8 = vor.u32 %v3627_v0, %v2832_v63  ;;  %v2706_v63 = vld [vmem:[#allocation7 + $0x1a0] sm:$0xf0] }
  0x46   :  { %v3691_v2 = vld [vmem:[#allocation7 + $0x49c] sm:$0xf0] }
  0x47   :  { %v3344_v3 = vld [vmem:[#allocation7 + $0x680] sm:$0xf] }
  0x48   :  { %v3755_v4 = vld [vmem:[#allocation7 + $0x69c] sm:$0xf0] }
  0x49   :  { %v2544_v9 = vld [vmem:[#allocation7 + $0x40] sm:$0xf]  ;;  %v3345_v11 = vor.u32 %v3755_v4, %v3344_v3  ;;  %v2962_v3 = vld [vmem:[#allocation7 + $0x3a0] sm:$0xf0] }
  0x4a   :  { %v3555_v10 = vld [vmem:[#allocation7 + $0x5c] sm:$0xf0]  ;;  %v3719_v4 = vld [vmem:[#allocation7 + $0x584] sm:$0xf] }
  0x4b   :  { %v2800_v12 = vld [vmem:[#allocation7 + $0x240] sm:$0xf] }
  0x4c   :  { %v3619_v13 = vld [vmem:[#allocation7 + $0x25c] sm:$0xf0] }
  0x4d   :  { %v3056_v14 = vld [vmem:[#allocation7 + $0x440] sm:$0xf] }
  0x4e   :  { %v3683_v18 = vld [vmem:[#allocation7 + $0x45c] sm:$0xf0] }
  0x4f   :  { %v3312_v19 = vld [vmem:[#allocation7 + $0x640] sm:$0xf] }
  0xa3   :  { %v184_v30 = vpop.f32.mrf.mxu0 }
  0xa4   :  { %v197_v31 = vpop.f32.mrf.mxu1  ;;  %v4040_v33 = vadd.f32 %v184_v30, %v127_v28  ;;  %v2896_v28 = vld [vmem:[#allocation7 + $0x300] sm:$0xf]  ;;  %v3441_v30 = vor.u32 %v3779_v21, %v3440_v20  ;;  %v2545_v21 = vor.u32 %v3555_v10, %v2544_v9 }
  0xa5   :  { %v4042_v34 = vadd.f32 %v197_v31, %v128_v29  ;;  %v235_v29 = vmul.f32 %v4056_v50, %v234_v52  ;;  %v3643_v31 = vld [vmem:[#allocation7 + $0x31c] sm:$0xf0] }
  0xa6   :  { %1898 = vmatpush.bf16.msrb.mxu3 %v3441_v30  ;;  %v3120_v52 = vld [vmem:[#allocation7 + $0x4c0] sm:$0xf] }
  0xa7   :  { %v227_v38 = vadd.f32 %v4042_v34, %v4040_v33  ;;  %v3121_v58 = vor.u32 %v3699_v53, %v3120_v52  ;;  %v3747_v20 = vld [vmem:[#allocation7 + $0x65c] sm:$0xf0]  ;;  %v3663_v52 = vld [vmem:[#allocation7 + $0x3c4] sm:$0xf] }
  0xa8   :  { %v2994_v53 = vld [vmem:[#allocation7 + $0x3e0] sm:$0xf0] }
  0xa9   :  { %v2997_v55 = vor.u32 %v3663_v52, %v2994_v53  ;;  %v3759_v52 = vld [vmem:[#allocation7 + $0x6c4] sm:$0xf] }
  0xaa   :  { %v210_v39 = vpop.f32.mrf.mxu2  ;;  %v3378_v53 = vld [vmem:[#allocation7 + $0x6e0] sm:$0xf0] }
  0xab   :  { %v4050_v40 = vadd.f32 %v210_v39, %v129_v36  ;;  %v223_v41 = vpop.f32.mrf.mxu3  ;;  %v186_v42 = vpop.f32.mrf.mxu0  ;;  %v3152_v36 = vld [vmem:[#allocation7 + $0x500] sm:$0xf] }
  0xac   :  { %v4052_v43 = vadd.f32 %v223_v41, %v130_v37  ;;  %v199_v44 = vpop.f32.mrf.mxu1  ;;  %v3707_v37 = vld [vmem:[#allocation7 + $0x51c] sm:$0xf0]  ;;  %v2641_v41 = vor.u32 %v3579_v25, %v2640_v24  ;;  %v2897_v42 = vor.u32 %v3643_v31, %v2896_v28  ;;  %v3313_v24 = vor.u32 %v3747_v20, %v3312_v19  ;;  %v3186_v19 = vld [vmem:[#allocation7 + $0x560] sm:$0xf0] }
  0xad   :  { %v228_v45 = vadd.f32 %v227_v38, %v4050_v40  ;;  %v3408_v38 = vld [vmem:[#allocation7 + $0x700] sm:$0xf]  ;;  %v3153_v44 = vor.u32 %v3707_v37, %v3152_v36 }
  0xae   :  { %v3771_v39 = vld [vmem:[#allocation7 + $0x71c] sm:$0xf0]  ;;  %1860 = vmatpush.bf16.msrb.mxu0 %v2641_v41  ;;  %1873 = vmatpush.bf16.msrb.mxu1 %v2897_v42 }
  0xaf   :  { %v229_v46 = vadd.f32 %v228_v45, %v4052_v43  ;;  %v2608_v45 = vld [vmem:[#allocation7 + $0xc0] sm:$0xf]  ;;  %v3409_v49 = vor.u32 %v3771_v39, %v3408_v38  ;;  %1886 = vmatpush.bf16.msrb.mxu2 %v3153_v44 }
  0xb0   :  { %v2512_v31 = vld [vmem:[#allocation7] sm:$0xf] }
  0xb1   :  { %230 = vadd.xlane.f32.xlu0 %v229_v46  ;;  %v3571_v46 = vld [vmem:[#allocation7 + $0xdc] sm:$0xf0]  ;;  %1899 = vmatpush.bf16.msrb.mxu3 %v3409_v49 }
  0xb2   :  { %v212_v47 = vpop.f32.mrf.mxu2  ;;  %v2609_v56 = vor.u32 %v3571_v46, %v2608_v45  ;;  %v3547_v36 = vld [vmem:[#allocation7 + $0x1c] sm:$0xf0] }
  0xb3   :  { %v225_v48 = vpop.f32.mrf.mxu3  ;;  %v2864_v47 = vld [vmem:[#allocation7 + $0x2c0] sm:$0xf]  ;;  %1887 = vmatpush.bf16.msrb.mxu2 %v3121_v58  ;;  %v2513_v38 = vor.u32 %v3547_v36, %v2512_v31  ;;  %v3791_v58 = vld [vmem:[#allocation7 + $0x7c4] sm:$0xf] }
  0xb4   :  { %v236_v48 = vadd.f32 %v4056_v50, %v235_v29  ;;  %v2865_v57 = vor.u32 %v3635_v51, %v2864_v47  ;;  %1861 = vmatpush.bf16.msrb.mxu0 %v2609_v56  ;;  %v2768_v37 = vld [vmem:[#allocation7 + $0x200] sm:$0xf]  ;;  %v2738_v51 = vld [vmem:[#allocation7 + $0x1e0] sm:$0xf0]  ;;  %v3509_v0 = vor.u32 %v3791_v58, %v3506_v60 }
  0xb5   :  { %1900 = vmatpush.bf16.msrb.mxu3 %v3377_v62  ;;  %v3611_v39 = vld [vmem:[#allocation7 + $0x21c] sm:$0xf0]  ;;  %v3727_v56 = vld [vmem:[#allocation7 + $0x5c4] sm:$0xf] }
  0xb6   :  { %v4063_v61 = vsel %vm237_vm1, %v4056_v50, %v236_v48  ;;  %1874 = vmatpush.bf16.msrb.mxu1 %v2865_v57  ;;  %v3089_v50 = vor.u32 %v3691_v2, %v3088_v1  ;;  %v3024_v41 = vld [vmem:[#allocation7 + $0x400] sm:$0xf]  ;;  %v2769_v44 = vor.u32 %v3611_v39, %v2768_v37  ;;  %v3599_v48 = vld [vmem:[#allocation7 + $0x1c4] sm:$0xf] }
  0xb7   :  { %v3675_v42 = vld [vmem:[#allocation7 + $0x41c] sm:$0xf0]  ;;  %v2741_v54 = vor.u32 %v3599_v48, %v2738_v51  ;;  %v3250_v57 = vld [vmem:[#allocation7 + $0x5e0] sm:$0xf0] }
  0xb8   :  { %1862 = vmatpush.bf16.msrb.mxu0 %v2577_v6  ;;  %1888 = vmatpush.bf16.msrb.mxu2 %v3089_v50  ;;  %v3025_v45 = vor.u32 %v3675_v42, %v3024_v41  ;;  %v3280_v46 = vld [vmem:[#allocation7 + $0x600] sm:$0xf]  ;;  %v3253_v59 = vor.u32 %v3727_v56, %v3250_v57  ;;  %v3591_v62 = vld [vmem:[#allocation7 + $0x184] sm:$0xf] }
  0xb9   :  { %1901 = vmatpush.bf16.msrb.mxu3 %v3345_v11  ;;  %v3739_v47 = vld [vmem:[#allocation7 + $0x61c] sm:$0xf0]  ;;  %v2709_v1 = vor.u32 %v3591_v62, %v2706_v63  ;;  %v3655_v2 = vld [vmem:[#allocation7 + $0x384] sm:$0xf] }
  0xba   :  { %1875 = vmatpush.bf16.msrb.mxu1 %v2833_v8  ;;  %v3281_v49 = vor.u32 %v3739_v47, %v3280_v46  ;;  %v3218_v6 = vld [vmem:[#allocation7 + $0x5a0] sm:$0xf0] }
  0xbb   :  { %v3474_v8 = vld [vmem:[#allocation7 + $0x7a0] sm:$0xf0]  ;;  %v3221_v9 = vor.u32 %v3719_v4, %v3218_v6 }
  0xbc   :  { %1863 = vmatpush.bf16.msrb.mxu0 %v2545_v21  ;;  %v3583_v50 = vld [vmem:[#allocation7 + $0x144] sm:$0xf] }
  0xbd   :  { %1902 = vmatpush.bf16.msrb.mxu3 %v3313_v24  ;;  %v2674_v11 = vld [vmem:[#allocation7 + $0x160] sm:$0xf0] }
  0xbe   :  { %v2642_v24 = vld [vmem:[#allocation7 + $0x120] sm:$0xf0] }
  0xbf   :  { %v3767_v37 = vld [vmem:[#allocation7 + $0x704] sm:$0xf] }
  0xc0   :  { %1864 = vmatpush.bf16.msrb.mxu0 %v2513_v38  ;;  %v3410_v38 = vld [vmem:[#allocation7 + $0x720] sm:$0xf0] }
  0xc1   :  { %1903 = vmatpush.bf16.msrb.mxu3 %v3281_v49  ;;  %v3413_v39 = vor.u32 %v3767_v37, %v3410_v38  ;;  %v3567_v41 = vld [vmem:[#allocation7 + $0xc4] sm:$0xf] }
  0xc2   :  { %v2610_v42 = vld [vmem:[#allocation7 + $0xe0] sm:$0xf0] }
  0xc3   :  { %v2866_v46 = vld [vmem:[#allocation7 + $0x2e0] sm:$0xf0] }
  0xc4   :  { %1909 = vmatpush.bf16.msra.mxu0 %v2741_v54  ;;  %v3695_v47 = vld [vmem:[#allocation7 + $0x4c4] sm:$0xf]  ;;  %v3381_v54 = vor.u32 %v3759_v52, %v3378_v53  ;;  %v280_v52 = vperm.slane %v4044_v35, 2 }
  0xc5   :  { %1948 = vmatpush.bf16.msra.mxu3 %v3509_v0  ;;  %v3122_v48 = vld [vmem:[#allocation7 + $0x4e0] sm:$0xf0] }
  0xc6   :  { %v3125_v51 = vor.u32 %v3695_v47, %v3122_v48  ;;  %v2578_v56 = vld [vmem:[#allocation7 + $0xa0] sm:$0xf0]  ;;  %v271_v47 = vperm.slane %v4038_v32, 1  ;;  %v272_v48 = vperm.slane %v4044_v35, 1  ;;  %v3000_v35 = vld [vmem:[#allocation7 + $0x3c8] sm:$0xf] }
  0xc7   :  { %v3623_v57 = vld [vmem:[#allocation7 + $0x284] sm:$0xf] }
  0xc8   :  { %1910 = vmatpush.bf16.msra.mxu0 %v2709_v1  ;;  %v3687_v60 = vld [vmem:[#allocation7 + $0x484] sm:$0xf] }
  0xc9   :  { %v3090_v62 = vld [vmem:[#allocation7 + $0x4a0] sm:$0xf0] }
  0xca   :  { %v3093_v0 = vor.u32 %v3687_v60, %v3090_v62  ;;  %v3751_v1 = vld [vmem:[#allocation7 + $0x684] sm:$0xf]  ;;  %v2744_v62 = vld [vmem:[#allocation7 + $0x1c8] sm:$0xf] }
  0xcb   :  { %v3551_v4 = vld [vmem:[#allocation7 + $0x44] sm:$0xf] }
  0xcc   :  { %v3615_v6 = vld [vmem:[#allocation7 + $0x244] sm:$0xf] }
 0x124   :  { %v231_v5 = vpop.xlane.xlu0 %230 }
 0x125   :  { %v239_v7 = vmul.f32 %v4063_v61, %v231_v5  ;;  %v2965_v5 = vor.u32 %v3655_v2, %v2962_v3  ;;  %v3346_v2 = vld [vmem:[#allocation7 + $0x6a0] sm:$0xf0] }
 0x126   :  { %v3349_v3 = vor.u32 %v3751_v1, %v3346_v2  ;;  %v3604_v1 = vld [vmem:[#allocation7 + $0x1e4] sm:$0xf0] }
 0x127   :  { %v4067_v15 = vsub.f32 %v4040_v33, %v239_v7  ;;  %v4070_v16 = vsub.f32 %v4042_v34, %v239_v7  ;;  %v4073_v17 = vsub.f32 %v4050_v40, %v239_v7  ;;  %v4076_v22 = vsub.f32 %v4052_v43, %v239_v7  ;;  %v3783_v7 = vld [vmem:[#allocation7 + $0x784] sm:$0xf]  ;;  %v3668_v2 = vld [vmem:[#allocation7 + $0x3e4] sm:$0xf0] }
 0x128   :  { %v2801_v34 = vor.u32 %v3619_v13, %v2800_v12  ;;  %v3057_v40 = vor.u32 %v3683_v18, %v3056_v14  ;;  %v3477_v10 = vor.u32 %v3783_v7, %v3474_v8  ;;  %v3647_v12 = vld [vmem:[#allocation7 + $0x344] sm:$0xf]  ;;  %v2677_v13 = vor.u32 %v3583_v50, %v2674_v11 }
 0x129   :  { %v244_v23 = vmul.f32 %v4067_v15, %v4067_v15  ;;  %v245_v33 = vmul.f32 %v4070_v16, %v4070_v16  ;;  %v246_v25 = vmul.f32 %v4073_v17, %v4073_v17  ;;  %v247_v43 = vmul.f32 %v4076_v22, %v4076_v22  ;;  %v2930_v14 = vld [vmem:[#allocation7 + $0x360] sm:$0xf0] }
 0x12a   :  { %1876 = vmatpush.bf16.msrb.mxu1 %v2801_v34  ;;  %1889 = vmatpush.bf16.msrb.mxu2 %v3057_v40  ;;  %v3711_v18 = vld [vmem:[#allocation7 + $0x544] sm:$0xf]  ;;  %v2933_v20 = vor.u32 %v3647_v12, %v2930_v14 }
 0x12b   :  { %v248_v28 = vadd.f32 %v245_v33, %v244_v23  ;;  %v3189_v21 = vor.u32 %v3711_v18, %v3186_v19  ;;  %v3775_v23 = vld [vmem:[#allocation7 + $0x744] sm:$0xf]  ;;  %1949 = vmatpush.bf16.msra.mxu3 %v3477_v10  ;;  %1911 = vmatpush.bf16.msra.mxu0 %v2677_v13 }
 0x12c   :  { %v3442_v33 = vld [vmem:[#allocation7 + $0x760] sm:$0xf0] }
 0x12d   :  { %v249_v29 = vadd.f32 %v248_v28, %v246_v25  ;;  %v3445_v34 = vor.u32 %v3775_v23, %v3442_v33  ;;  %v3575_v40 = vld [vmem:[#allocation7 + $0x104] sm:$0xf] }
 0x12e   :  { %1877 = vmatpush.bf16.msrb.mxu1 %v2769_v44  ;;  %1890 = vmatpush.bf16.msrb.mxu2 %v3025_v45  ;;  %v3639_v25 = vld [vmem:[#allocation7 + $0x304] sm:$0xf]  ;;  %v2645_v28 = vor.u32 %v3575_v40, %v2642_v24  ;;  %v2613_v45 = vor.u32 %v3567_v41, %v2610_v42  ;;  %v269_v42 = vperm.slane %v4032_v26, 1 }
 0x12f   :  { %v250_v30 = vadd.f32 %v249_v29, %v247_v43  ;;  %v2898_v43 = vld [vmem:[#allocation7 + $0x320] sm:$0xf0]  ;;  %1950 = vmatpush.bf16.msra.mxu3 %v3445_v34 }
 0x130   :  { %v3703_v29 = vld [vmem:[#allocation7 + $0x504] sm:$0xf]  ;;  %v2901_v31 = vor.u32 %v3639_v25, %v2898_v43  ;;  %1912 = vmatpush.bf16.msra.mxu0 %v2645_v28 }
 0x131   :  { %251 = vadd.xlane.f32.xlu0 %v250_v30  ;;  %v3154_v30 = vld [vmem:[#allocation7 + $0x520] sm:$0xf0] }
 0x132   :  { %1922 = vmatpush.bf16.msra.mxu1 %v2997_v55  ;;  %1935 = vmatpush.bf16.msra.mxu2 %v3253_v59  ;;  %v3157_v36 = vor.u32 %v3703_v29, %v3154_v30  ;;  %v3631_v44 = vld [vmem:[#allocation7 + $0x2c4] sm:$0xf] }
 0x133   :  { %v2869_v49 = vor.u32 %v3631_v44, %v2866_v46  ;;  %1951 = vmatpush.bf16.msra.mxu3 %v3413_v39  ;;  %v3559_v55 = vld [vmem:[#allocation7 + $0x84] sm:$0xf]  ;;  %v270_v46 = vperm.slane %v4034_v27, 1 }
 0x134   :  { %1913 = vmatpush.bf16.msra.mxu0 %v2613_v45  ;;  %v2581_v58 = vor.u32 %v3559_v55, %v2578_v56  ;;  %v2834_v59 = vld [vmem:[#allocation7 + $0x2a0] sm:$0xf0]  ;;  %v277_v45 = vperm.slane %v4032_v26, 2 }
 0x135   :  { %v2837_v63 = vor.u32 %v3623_v57, %v2834_v59  ;;  %v2802_v8 = vld [vmem:[#allocation7 + $0x260] sm:$0xf0] }
 0x136   :  { %1923 = vmatpush.bf16.msra.mxu1 %v2965_v5  ;;  %1936 = vmatpush.bf16.msra.mxu2 %v3221_v9  ;;  %v2546_v5 = vld [vmem:[#allocation7 + $0x60] sm:$0xf0]  ;;  %v2805_v50 = vor.u32 %v3615_v6, %v2802_v8  ;;  %v3001_v8 = vor.u32 %v3668_v2, %v3000_v35  ;;  %v2584_v2 = vld [vmem:[#allocation7 + $0x88] sm:$0xf] }
 0x137   :  { %1952 = vmatpush.bf16.msra.mxu3 %v3381_v54  ;;  %v2549_v7 = vor.u32 %v3551_v4, %v2546_v5  ;;  %v3679_v9 = vld [vmem:[#allocation7 + $0x444] sm:$0xf]  ;;  %v3512_v4 = vld [vmem:[#allocation7 + $0x7c8] sm:$0xf] }
 0x138   :  { %1914 = vmatpush.bf16.msra.mxu0 %v2581_v58  ;;  %v3058_v10 = vld [vmem:[#allocation7 + $0x460] sm:$0xf0] }
 0x139   :  { %v3061_v11 = vor.u32 %v3679_v9, %v3058_v10  ;;  %v3743_v12 = vld [vmem:[#allocation7 + $0x644] sm:$0xf] }
 0x13a   :  { %1924 = vmatpush.bf16.msra.mxu1 %v2933_v20  ;;  %1937 = vmatpush.bf16.msra.mxu2 %v3189_v21  ;;  %v3314_v13 = vld [vmem:[#allocation7 + $0x660] sm:$0xf0] }
 0x13b   :  { %1953 = vmatpush.bf16.msra.mxu3 %v3349_v3  ;;  %v3317_v14 = vor.u32 %v3743_v12, %v3314_v13  ;;  %v3543_v18 = vld [vmem:[#allocation7 + $0x4] sm:$0xf]  ;;  %v3256_v3 = vld [vmem:[#allocation7 + $0x5c8] sm:$0xf] }
 0x13c   :  { %v2514_v19 = vld [vmem:[#allocation7 + $0x20] sm:$0xf0]  ;;  %1915 = vmatpush.bf16.msra.mxu0 %v2549_v7  ;;  %v2745_v7 = vor.u32 %v3604_v1, %v2744_v62  ;;  %v2712_v12 = vld [vmem:[#allocation7 + $0x188] sm:$0xf] }
 0x13d   :  { %v3607_v20 = vld [vmem:[#allocation7 + $0x204] sm:$0xf]  ;;  %v2517_v21 = vor.u32 %v3543_v18, %v2514_v19  ;;  %v3596_v13 = vld [vmem:[#allocation7 + $0x1a4] sm:$0xf0] }
 0x13e   :  { %1925 = vmatpush.bf16.msra.mxu1 %v2901_v31  ;;  %1938 = vmatpush.bf16.msra.mxu2 %v3157_v36  ;;  %v2770_v23 = vld [vmem:[#allocation7 + $0x220] sm:$0xf0]  ;;  %v2968_v19 = vld [vmem:[#allocation7 + $0x388] sm:$0xf] }
 0x13f   :  { %v3671_v33 = vld [vmem:[#allocation7 + $0x404] sm:$0xf]  ;;  %v2773_v24 = vor.u32 %v3607_v20, %v2770_v23  ;;  %1954 = vmatpush.bf16.msra.mxu3 %v3317_v14  ;;  %v3660_v20 = vld [vmem:[#allocation7 + $0x3a4] sm:$0xf0] }
 0x140   :  { %v3026_v34 = vld [vmem:[#allocation7 + $0x420] sm:$0xf0]  ;;  %1916 = vmatpush.bf16.msra.mxu0 %v2517_v21  ;;  %v3224_v21 = vld [vmem:[#allocation7 + $0x588] sm:$0xf] }
 0x141   :  { %v3029_v25 = vor.u32 %v3671_v33, %v3026_v34  ;;  %v3735_v28 = vld [vmem:[#allocation7 + $0x604] sm:$0xf]  ;;  %v3724_v23 = vld [vmem:[#allocation7 + $0x5a4] sm:$0xf0] }
 0x142   :  { %1926 = vmatpush.bf16.msra.mxu1 %v2869_v49  ;;  %1939 = vmatpush.bf16.msra.mxu2 %v3125_v51  ;;  %v3282_v43 = vld [vmem:[#allocation7 + $0x620] sm:$0xf0]  ;;  %v278_v49 = vperm.slane %v4034_v27, 2  ;;  %v279_v51 = vperm.slane %v4038_v32, 2  ;;  %v3480_v33 = vld [vmem:[#allocation7 + $0x788] sm:$0xf] }
 0x143   :  { %v3285_v30 = vor.u32 %v3735_v28, %v3282_v43  ;;  %v3788_v34 = vld [vmem:[#allocation7 + $0x7a4] sm:$0xf0]  ;;  %v3225_v43 = vor.u32 %v3724_v23, %v3224_v21 }
 0x144   :  { %v3588_v28 = vld [vmem:[#allocation7 + $0x164] sm:$0xf0] }
 0x145   :  { %1955 = vmatpush.bf16.msra.mxu3 %v3285_v30  ;;  %v2936_v30 = vld [vmem:[#allocation7 + $0x348] sm:$0xf] }
 0x146   :  { %1927 = vmatpush.bf16.msra.mxu1 %v2837_v63  ;;  %1940 = vmatpush.bf16.msra.mxu2 %v3093_v0  ;;  %v3636_v62 = vld [vmem:[#allocation7 + $0x2e4] sm:$0xf0] }
 0x147   :  { %v3620_v21 = vld [vmem:[#allocation7 + $0x264] sm:$0xf0] }
 0x148   :  { %v3064_v23 = vld [vmem:[#allocation7 + $0x448] sm:$0xf] }
 0x14a   :  { %1928 = vmatpush.bf16.msra.mxu1 %v2805_v50  ;;  %1941 = vmatpush.bf16.msra.mxu2 %v3061_v11 }
 0x14e   :  { %1929 = vmatpush.bf16.msra.mxu1 %v2773_v24  ;;  %1942 = vmatpush.bf16.msra.mxu2 %v3029_v25  ;;  %v2969_v24 = vor.u32 %v3660_v20, %v2968_v19  ;;  %v2680_v25 = vld [vmem:[#allocation7 + $0x148] sm:$0xf] }
 0x14f   :  { %v2808_v20 = vld [vmem:[#allocation7 + $0x248] sm:$0xf] }
 0x1a4   :  { %v252_v40 = vpop.xlane.xlu0 %251 }
 0x1a5   :  { %v253_v29 = vmul.f32 %v252_v40, %v4063_v61  ;;  %v2713_v40 = vor.u32 %v3596_v13, %v2712_v12  ;;  %v2552_v13 = vld [vmem:[#allocation7 + $0x48] sm:$0xf] }
 0x1a7   :  { %v254_v31 = vadd.f32 1e-05, %v253_v29  ;;  %v3481_v29 = vor.u32 %v3788_v34, %v3480_v33  ;;  %v3684_v33 = vld [vmem:[#allocation7 + $0x464] sm:$0xf0] }
 0x1a8   :  { %v3320_v34 = vld [vmem:[#allocation7 + $0x648] sm:$0xf] }
 0x1a9   :  { %3812 = vrsqrt.f32 %v254_v31  ;;  %vm261_vm3 = vweird.f32 %v254_v31 }
 0x1af   :  { %v3813_v36 = vpop.eup %3812 }
 0x1b0   :  { %v256_v37 = vmul.f32 %v3813_v36, %v254_v31  ;;  %vm262_vm2 = vweird.f32 %v3813_v36  ;;  %v3652_v31 = vld [vmem:[#allocation7 + $0x364] sm:$0xf0] }
 0x1b1   :  { %vm263_vm4 = vmor %vm261_vm3, %vm262_vm2 }
 0x1b2   :  { %v257_v38 = vmul.f32 %v3813_v36, %v256_v37  ;;  %v3716_v37 = vld [vmem:[#allocation7 + $0x564] sm:$0xf0] }
 0x1b4   :  { %v258_v39 = vmul.f32 0.5, %v257_v38  ;;  %v3448_v38 = vld [vmem:[#allocation7 + $0x748] sm:$0xf] }
 0x1b6   :  { %v259_v41 = vsub.f32 1.5, %v258_v39  ;;  %v3780_v39 = vld [vmem:[#allocation7 + $0x764] sm:$0xf0] }
 0x1b8   :  { %v260_v44 = vmul.f32 %v3813_v36, %v259_v41  ;;  %v2681_v41 = vor.u32 %v3588_v28, %v2680_v25  ;;  %v2809_v28 = vor.u32 %v3620_v21, %v2808_v20  ;;  %v3640_v21 = vld [vmem:[#allocation7 + $0x30c] sm:$0xf] }
 0x1ba   :  { %v264_v53 = vsel %vm263_vm4, %v3813_v36, %v260_v44  ;;  %v3192_v36 = vld [vmem:[#allocation7 + $0x548] sm:$0xf] }
 0x1bb   :  { %v265_v54 = vmul.f32 %v264_v53, %v4067_v15  ;;  %v266_v55 = vmul.f32 %v264_v53, %v4070_v16  ;;  %v267_v26 = vmul.f32 %v264_v53, %v4073_v17  ;;  %v268_v56 = vmul.f32 %v264_v53, %v4076_v22  ;;  %v3732_v15 = vld [vmem:[#allocation7 + $0x5e4] sm:$0xf0] }
 0x1bc   :  { %v3796_v22 = vld [vmem:[#allocation7 + $0x7e4] sm:$0xf0]  ;;  %v3257_v14 = vor.u32 %v3732_v15, %v3256_v3 }
 0x1bd   :  { %v273_v57 = vmul.f32 %v269_v42, %v265_v54  ;;  %v274_v58 = vmul.f32 %v270_v46, %v266_v55  ;;  %v275_v59 = vmul.f32 %v271_v47, %v267_v26  ;;  %v276_v60 = vmul.f32 %v272_v48, %v268_v56  ;;  %v2648_v44 = vld [vmem:[#allocation7 + $0x108] sm:$0xf] }
 0x1be   :  { %v3513_v18 = vor.u32 %v3796_v22, %v3512_v4  ;;  %v2937_v42 = vor.u32 %v3652_v31, %v2936_v30  ;;  %v3193_v46 = vor.u32 %v3716_v37, %v3192_v36  ;;  %v3449_v47 = vor.u32 %v3780_v39, %v3448_v38  ;;  %v2904_v48 = vld [vmem:[#allocation7 + $0x308] sm:$0xf] }
 0x1bf   :  { %v281_v63 = vadd.f32 %v277_v45, %v273_v57  ;;  %v282_v27 = vadd.f32 %v278_v49, %v274_v58  ;;  %v283_v0 = vadd.f32 %v279_v51, %v275_v59  ;;  %v284_v32 = vadd.f32 %v280_v52, %v276_v60  ;;  %v3580_v45 = vld [vmem:[#allocation7 + $0x124] sm:$0xf0] }
 0x1c0   :  { %v3644_v49 = vld [vmem:[#allocation7 + $0x324] sm:$0xf0]  ;;  %v2649_v55 = vor.u32 %v3580_v45, %v2648_v44  ;;  %v3065_v31 = vor.u32 %v3684_v33, %v3064_v23  ;;  %v2746_v44 = vld [vmem:[#allocation7 + $0x1e8] sm:$0xf0] }
 0x1c1   :  { %v285_v16 = vmax.f32 %v281_v63, 0.0  ;;  %v286_v5 = vmax.f32 %v282_v27, 0.0  ;;  %v287_v17 = vmax.f32 %v283_v0, 0.0  ;;  %v288_v6 = vmax.f32 %v284_v32, 0.0  ;;  %v3160_v51 = vld [vmem:[#allocation7 + $0x508] sm:$0xf] }
 0x1c2   :  { %v3708_v52 = vld [vmem:[#allocation7 + $0x524] sm:$0xf0]  ;;  %v2905_v26 = vor.u32 %v3644_v49, %v2904_v48  ;;  %v3664_v45 = vld [vmem:[#allocation7 + $0x3cc] sm:$0xf] }
 0x1c3   :  { %v4099_v9 = vpack.c.bf16 %v285_v16, %v285_v16  ;;  %v4101_v10 = vpack.c.bf16 %v286_v5, %v286_v5  ;;  %v4103_v50 = vpack.c.bf16 %v287_v17, %v287_v17  ;;  %v4105_v11 = vpack.c.bf16 %v288_v6, %v288_v6  ;;  %v3416_v53 = vld [vmem:[#allocation7 + $0x708] sm:$0xf]  ;;  %v2906_v23 = vld [vmem:[#allocation7 + $0x328] sm:$0xf0] }
 0x1c4   :  { %v3772_v54 = vld [vmem:[#allocation7 + $0x724] sm:$0xf0]  ;;  %v3161_v58 = vor.u32 %v3708_v52, %v3160_v51  ;;  %v3258_v51 = vld [vmem:[#allocation7 + $0x5e8] sm:$0xf0] }
 0x1c5   :  { %1865 = vmatmul.bf16.vlgmr.msrb.gmra.mxu0 %v4099_v9  ;;  %1878 = vmatmul.bf16.vlgmr.msrb.gmra.mxu1 %v4101_v10  ;;  %v2616_v56 = vld [vmem:[#allocation7 + $0xc8] sm:$0xf]  ;;  %v3417_v59 = vor.u32 %v3772_v54, %v3416_v53  ;;  %v3792_v52 = vld [vmem:[#allocation7 + $0x7cc] sm:$0xf] }
 0x1c6   :  { %1891 = vmatmul.bf16.vlgmr.msrb.gmra.mxu2 %v4103_v50  ;;  %1904 = vmatmul.bf16.vlgmr.msrb.gmra.mxu3 %v4105_v11  ;;  %v3572_v57 = vld [vmem:[#allocation7 + $0xe4] sm:$0xf0]  ;;  %v3514_v53 = vld [vmem:[#allocation7 + $0x7e8] sm:$0xf0] }
 0x1c7   :  { %1961 = vmatpush.bf16.msrb.mxu0 %v2745_v7  ;;  %1974 = vmatpush.bf16.msrb.mxu1 %v3001_v8  ;;  %v2872_v60 = vld [vmem:[#allocation7 + $0x2c8] sm:$0xf]  ;;  %v2617_v1 = vor.u32 %v3572_v57, %v2616_v56  ;;  %v3592_v57 = vld [vmem:[#allocation7 + $0x18c] sm:$0xf] }
 0x1c8   :  { %1987 = vmatpush.bf16.msrb.mxu2 %v3257_v14  ;;  %2000 = vmatpush.bf16.msrb.mxu3 %v3513_v18  ;;  %v3128_v63 = vld [vmem:[#allocation7 + $0x4c8] sm:$0xf]  ;;  %v2873_v35 = vor.u32 %v3636_v62, %v2872_v60  ;;  %v3517_v60 = vor.u32 %v3792_v52, %v3514_v53  ;;  %v3656_v62 = vld [vmem:[#allocation7 + $0x38c] sm:$0xf] }
 0x1c9   :  { %v3700_v27 = vld [vmem:[#allocation7 + $0x4e4] sm:$0xf0]  ;;  %v3704_v33 = vld [vmem:[#allocation7 + $0x50c] sm:$0xf] }
 0x1ca   :  { %v3384_v0 = vld [vmem:[#allocation7 + $0x6c8] sm:$0xf]  ;;  %v3129_v15 = vor.u32 %v3700_v27, %v3128_v63  ;;  %v2970_v63 = vld [vmem:[#allocation7 + $0x3a8] sm:$0xf0] }
 0x1cb   :  { %1962 = vmatpush.bf16.msrb.mxu0 %v2713_v40  ;;  %1975 = vmatpush.bf16.msrb.mxu1 %v2969_v24  ;;  %v3764_v32 = vld [vmem:[#allocation7 + $0x6e4] sm:$0xf0]  ;;  %v3720_v27 = vld [vmem:[#allocation7 + $0x58c] sm:$0xf] }
 0x1cc   :  { %1988 = vmatpush.bf16.msrb.mxu2 %v3225_v43  ;;  %2001 = vmatpush.bf16.msrb.mxu3 %v3481_v29  ;;  %v3564_v3 = vld [vmem:[#allocation7 + $0xa4] sm:$0xf0]  ;;  %v3385_v4 = vor.u32 %v3764_v32, %v3384_v0  ;;  %v3226_v0 = vld [vmem:[#allocation7 + $0x5a8] sm:$0xf0] }
 0x1cd   :  { %v2840_v16 = vld [vmem:[#allocation7 + $0x288] sm:$0xf]  ;;  %v2585_v8 = vor.u32 %v3564_v3, %v2584_v2  ;;  %v3784_v32 = vld [vmem:[#allocation7 + $0x78c] sm:$0xf]  ;;  %v2973_v2 = vor.u32 %v3656_v62, %v2970_v63 }
 0x1ce   :  { %v3628_v5 = vld [vmem:[#allocation7 + $0x2a4] sm:$0xf0]  ;;  %v3584_v3 = vld [vmem:[#allocation7 + $0x14c] sm:$0xf] }
 0x1cf   :  { %1963 = vmatpush.bf16.msrb.mxu0 %v2681_v41  ;;  %1976 = vmatpush.bf16.msrb.mxu1 %v2937_v42  ;;  %v3096_v17 = vld [vmem:[#allocation7 + $0x488] sm:$0xf]  ;;  %v2841_v12 = vor.u32 %v3628_v5, %v2840_v16  ;;  %v3600_v42 = vld [vmem:[#allocation7 + $0x1cc] sm:$0xf] }
 0x1d0   :  { %1989 = vmatpush.bf16.msrb.mxu2 %v3193_v46  ;;  %2002 = vmatpush.bf16.msrb.mxu3 %v3449_v47  ;;  %v3692_v6 = vld [vmem:[#allocation7 + $0x4a4] sm:$0xf0]  ;;  %v3002_v46 = vld [vmem:[#allocation7 + $0x3e8] sm:$0xf0] }
 0x1d1   :  { %v3352_v22 = vld [vmem:[#allocation7 + $0x688] sm:$0xf]  ;;  %v3097_v18 = vor.u32 %v3692_v6, %v3096_v17  ;;  %v3728_v47 = vld [vmem:[#allocation7 + $0x5cc] sm:$0xf]  ;;  %v3005_v56 = vor.u32 %v3664_v45, %v3002_v46 }
 0x1d2   :  { %v3756_v7 = vld [vmem:[#allocation7 + $0x6a4] sm:$0xf0]  ;;  %v3648_v5 = vld [vmem:[#allocation7 + $0x34c] sm:$0xf] }
 0x1d3   :  { %1964 = vmatpush.bf16.msrb.mxu0 %v2649_v55  ;;  %1977 = vmatpush.bf16.msrb.mxu1 %v2905_v26  ;;  %v3556_v14 = vld [vmem:[#allocation7 + $0x64] sm:$0xf0]  ;;  %v3353_v19 = vor.u32 %v3756_v7, %v3352_v22  ;;  %v2749_v26 = vor.u32 %v3600_v42, %v2746_v44  ;;  %v2938_v17 = vld [vmem:[#allocation7 + $0x368] sm:$0xf0] }
 0x1d4   :  { %1990 = vmatpush.bf16.msrb.mxu2 %v3161_v58  ;;  %2003 = vmatpush.bf16.msrb.mxu3 %v3417_v59  ;;  %v3748_v40 = vld [vmem:[#allocation7 + $0x664] sm:$0xf0]  ;;  %v2553_v25 = vor.u32 %v3556_v14, %v2552_v13  ;;  %v2714_v58 = vld [vmem:[#allocation7 + $0x1a8] sm:$0xf0]  ;;  %v3261_v59 = vor.u32 %v3728_v47, %v3258_v51  ;;  %v2941_v13 = vor.u32 %v3648_v5, %v2938_v17 }
 0x1d5   :  { %1917 = vmatmul.bf16.vlgmr.msra.gmra.mxu0 %v4099_v9  ;;  %1930 = vmatmul.bf16.vlgmr.msra.gmra.mxu1 %v4101_v10  ;;  %v2520_v24 = vld [vmem:[#allocation7 + $0x8] sm:$0xf]  ;;  %v3321_v36 = vor.u32 %v3748_v40, %v3320_v34  ;;  %v3712_v6 = vld [vmem:[#allocation7 + $0x54c] sm:$0xf] }
 0x1d6   :  { %1943 = vmatmul.bf16.vlgmr.msra.gmra.mxu2 %v4103_v50  ;;  %1956 = vmatmul.bf16.vlgmr.msra.gmra.mxu3 %v4105_v11  ;;  %v3548_v43 = vld [vmem:[#allocation7 + $0x24] sm:$0xf0]  ;;  %v3194_v22 = vld [vmem:[#allocation7 + $0x568] sm:$0xf0] }
 0x1d7   :  { %1965 = vmatpush.bf16.msrb.mxu0 %v2617_v1  ;;  %1978 = vmatpush.bf16.msrb.mxu1 %v2873_v35  ;;  %v2776_v29 = vld [vmem:[#allocation7 + $0x208] sm:$0xf]  ;;  %v2521_v48 = vor.u32 %v3548_v43, %v2520_v24  ;;  %v3482_v1 = vld [vmem:[#allocation7 + $0x7a8] sm:$0xf0]  ;;  %v2717_v35 = vor.u32 %v3592_v57, %v2714_v58 }
 0x1d8   :  { %1991 = vmatpush.bf16.msrb.mxu2 %v3129_v15  ;;  %2004 = vmatpush.bf16.msrb.mxu3 %v3385_v4  ;;  %v3612_v30 = vld [vmem:[#allocation7 + $0x224] sm:$0xf0]  ;;  %v2682_v15 = vld [vmem:[#allocation7 + $0x168] sm:$0xf0]  ;;  %v3229_v4 = vor.u32 %v3720_v27, %v3226_v0  ;;  %v3485_v16 = vor.u32 %v3784_v32, %v3482_v1 }
 0x1d9   :  { %v3032_v37 = vld [vmem:[#allocation7 + $0x408] sm:$0xf]  ;;  %v2777_v49 = vor.u32 %v3612_v30, %v2776_v29  ;;  %v3776_v7 = vld [vmem:[#allocation7 + $0x74c] sm:$0xf] }
 0x1da   :  { %v3676_v38 = vld [vmem:[#allocation7 + $0x424] sm:$0xf0]  ;;  %v3576_v14 = vld [vmem:[#allocation7 + $0x10c] sm:$0xf] }
 0x1db   :  { %1966 = vmatpush.bf16.msrb.mxu0 %v2585_v8  ;;  %1979 = vmatpush.bf16.msrb.mxu1 %v2841_v12  ;;  %v3288_v39 = vld [vmem:[#allocation7 + $0x608] sm:$0xf]  ;;  %v3033_v54 = vor.u32 %v3676_v38, %v3032_v37  ;;  %v3450_v8 = vld [vmem:[#allocation7 + $0x768] sm:$0xf0]  ;;  %v2685_v12 = vor.u32 %v3584_v3, %v2682_v15 }
 0x1dc   :  { %1992 = vmatpush.bf16.msrb.mxu2 %v3097_v18  ;;  %2005 = vmatpush.bf16.msrb.mxu3 %v3353_v19  ;;  %v3740_v41 = vld [vmem:[#allocation7 + $0x624] sm:$0xf0]  ;;  %v2650_v18 = vld [vmem:[#allocation7 + $0x128] sm:$0xf0]  ;;  %v3197_v19 = vor.u32 %v3712_v6, %v3194_v22  ;;  %v3453_v20 = vor.u32 %v3776_v7, %v3450_v8 }
 0x1dd   :  { %v3289_v55 = vor.u32 %v3740_v41, %v3288_v39  ;;  %v3162_v34 = vld [vmem:[#allocation7 + $0x528] sm:$0xf0] }
 0x1de   :  { %v3768_v40 = vld [vmem:[#allocation7 + $0x70c] sm:$0xf]  ;;  %v3165_v30 = vor.u32 %v3704_v33, %v3162_v34  ;;  %v3733_v33 = vld [vmem:[#allocation7 + $0x5ec] sm:$0xf0] }
 0x1df   :  { %1967 = vmatpush.bf16.msrb.mxu0 %v2553_v25  ;;  %1980 = vmatpush.bf16.msrb.mxu1 %v2809_v28  ;;  %v3418_v24 = vld [vmem:[#allocation7 + $0x728] sm:$0xf0]  ;;  %v2653_v25 = vor.u32 %v3576_v14, %v2650_v18  ;;  %v2909_v28 = vor.u32 %v3640_v21, %v2906_v23  ;;  %v3605_v14 = vld [vmem:[#allocation7 + $0x1ec] sm:$0xf0] }
 0x1e0   :  { %1993 = vmatpush.bf16.msrb.mxu2 %v3065_v31  ;;  %2006 = vmatpush.bf16.msrb.mxu3 %v3321_v36  ;;  %v3568_v43 = vld [vmem:[#allocation7 + $0xcc] sm:$0xf]  ;;  %v3421_v31 = vor.u32 %v3768_v40, %v3418_v24  ;;  %v3008_v18 = vld [vmem:[#allocation7 + $0x3d0] sm:$0xf] }
 0x1e1   :  { %v2618_v29 = vld [vmem:[#allocation7 + $0xe8] sm:$0xf0]  ;;  %v3520_v34 = vld [vmem:[#allocation7 + $0x7d0] sm:$0xf] }
 0x1e2   :  { %v3632_v36 = vld [vmem:[#allocation7 + $0x2cc] sm:$0xf]  ;;  %v2621_v44 = vor.u32 %v3568_v43, %v2618_v29  ;;  %v3797_v40 = vld [vmem:[#allocation7 + $0x7ec] sm:$0xf0] }
 0x1e3   :  { %1968 = vmatpush.bf16.msrb.mxu0 %v2521_v48  ;;  %1981 = vmatpush.bf16.msrb.mxu1 %v2777_v49  ;;  %v2874_v37 = vld [vmem:[#allocation7 + $0x2e8] sm:$0xf0]  ;;  %v2720_v29 = vld [vmem:[#allocation7 + $0x190] sm:$0xf] }
 0x1e4   :  { %1994 = vmatpush.bf16.msrb.mxu2 %v3033_v54  ;;  %2007 = vmatpush.bf16.msrb.mxu3 %v3289_v55  ;;  %v3696_v38 = vld [vmem:[#allocation7 + $0x4cc] sm:$0xf]  ;;  %v2877_v45 = vor.u32 %v3632_v36, %v2874_v37  ;;  %v3521_v36 = vor.u32 %v3797_v40, %v3520_v34  ;;  %v2976_v37 = vld [vmem:[#allocation7 + $0x390] sm:$0xf] }
 0x1e5   :  { %v3130_v39 = vld [vmem:[#allocation7 + $0x4e8] sm:$0xf0]  ;;  %v3629_v34 = vld [vmem:[#allocation7 + $0x2ac] sm:$0xf0] }
 0x1e6   :  { %1969 = vmatmul.bf16.vlgmr.msrb.gmra.mxu0 %v4099_v9  ;;  %1982 = vmatmul.bf16.vlgmr.msrb.gmra.mxu1 %v4101_v10  ;;  %v3760_v41 = vld [vmem:[#allocation7 + $0x6cc] sm:$0xf]  ;;  %v3133_v48 = vor.u32 %v3696_v38, %v3130_v39  ;;  %v3661_v38 = vld [vmem:[#allocation7 + $0x3ac] sm:$0xf0] }
 0x1e7   :  { %2013 = vmatpush.bf16.msra.mxu0 %v2749_v26  ;;  %2026 = vmatpush.bf16.msra.mxu1 %v3005_v56  ;;  %v3386_v42 = vld [vmem:[#allocation7 + $0x6e8] sm:$0xf0]  ;;  %v3232_v39 = vld [vmem:[#allocation7 + $0x590] sm:$0xf] }
 0x1e8   :  { %2039 = vmatpush.bf16.msra.mxu2 %v3261_v59  ;;  %2052 = vmatpush.bf16.msra.mxu3 %v3517_v60  ;;  %v3560_v46 = vld [vmem:[#allocation7 + $0x8c] sm:$0xf]  ;;  %v3389_v49 = vor.u32 %v3760_v41, %v3386_v42  ;;  %v3725_v41 = vld [vmem:[#allocation7 + $0x5ac] sm:$0xf0] }
 0x1e9   :  { %1995 = vmatmul.bf16.vlgmr.msrb.gmra.mxu2 %v4103_v50  ;;  %2008 = vmatmul.bf16.vlgmr.msrb.gmra.mxu3 %v4105_v11  ;;  %v2586_v47 = vld [vmem:[#allocation7 + $0xa8] sm:$0xf0]  ;;  %v3488_v42 = vld [vmem:[#allocation7 + $0x790] sm:$0xf] }
 0x1ea   :  { %v3624_v51 = vld [vmem:[#allocation7 + $0x28c] sm:$0xf]  ;;  %v2589_v56 = vor.u32 %v3560_v46, %v2586_v47  ;;  %v2977_v46 = vor.u32 %v3661_v38, %v2976_v37  ;;  %v2688_v47 = vld [vmem:[#allocation7 + $0x150] sm:$0xf] }
 0x1eb   :  { %2014 = vmatpush.bf16.msra.mxu0 %v2717_v35  ;;  %2027 = vmatpush.bf16.msra.mxu1 %v2973_v2  ;;  %v2842_v52 = vld [vmem:[#allocation7 + $0x2a8] sm:$0xf0]  ;;  %v3104_v40 = vld [vmem:[#allocation7 + $0x490] sm:$0xf] }
 0x1ec   :  { %2040 = vmatpush.bf16.msra.mxu2 %v3229_v4  ;;  %2053 = vmatpush.bf16.msra.mxu3 %v3485_v16  ;;  %v3688_v53 = vld [vmem:[#allocation7 + $0x48c] sm:$0xf]  ;;  %v2845_v57 = vor.u32 %v3624_v51, %v2842_v52  ;;  %v2944_v52 = vld [vmem:[#allocation7 + $0x350] sm:$0xf] }
 0x1ed   :  { %v3098_v54 = vld [vmem:[#allocation7 + $0x4a8] sm:$0xf0]  ;;  %v2816_v38 = vld [vmem:[#allocation7 + $0x250] sm:$0xf] }
 0x1ee   :  { %v3752_v55 = vld [vmem:[#allocation7 + $0x68c] sm:$0xf]  ;;  %v3101_v60 = vor.u32 %v3688_v53, %v3098_v54  ;;  %v3653_v53 = vld [vmem:[#allocation7 + $0x36c] sm:$0xf0] }
 0x1ef   :  { %2015 = vmatpush.bf16.msra.mxu0 %v2685_v12  ;;  %2028 = vmatpush.bf16.msra.mxu1 %v2941_v13  ;;  %v3354_v26 = vld [vmem:[#allocation7 + $0x6a8] sm:$0xf0]  ;;  %v2752_v13 = vld [vmem:[#allocation7 + $0x1d0] sm:$0xf] }
 0x1f0   :  { %2041 = vmatpush.bf16.msra.mxu2 %v3197_v19  ;;  %2054 = vmatpush.bf16.msra.mxu3 %v3453_v20  ;;  %v3552_v58 = vld [vmem:[#allocation7 + $0x4c] sm:$0xf]  ;;  %v3357_v62 = vor.u32 %v3752_v55, %v3354_v26  ;;  %v3669_v19 = vld [vmem:[#allocation7 + $0x3ec] sm:$0xf0] }
 0x1f1   :  { %v2554_v59 = vld [vmem:[#allocation7 + $0x68] sm:$0xf0]  ;;  %v3264_v20 = vld [vmem:[#allocation7 + $0x5d0] sm:$0xf]  ;;  %v3009_v43 = vor.u32 %v3669_v19, %v3008_v18 }
 0x1f2   :  { %v3616_v63 = vld [vmem:[#allocation7 + $0x24c] sm:$0xf]  ;;  %v2557_v3 = vor.u32 %v3552_v58, %v2554_v59  ;;  %v3200_v54 = vld [vmem:[#allocation7 + $0x550] sm:$0xf]  ;;  %v2945_v58 = vor.u32 %v3653_v53, %v2944_v52 }
 0x1f3   :  { %2016 = vmatpush.bf16.msra.mxu0 %v2653_v25  ;;  %2029 = vmatpush.bf16.msra.mxu1 %v2909_v28  ;;  %v2810_v27 = vld [vmem:[#allocation7 + $0x268] sm:$0xf0]  ;;  %v2753_v28 = vor.u32 %v3605_v14, %v2752_v13  ;;  %v3717_v55 = vld [vmem:[#allocation7 + $0x56c] sm:$0xf0] }
 0x1f4   :  { %2042 = vmatpush.bf16.msra.mxu2 %v3165_v30  ;;  %2055 = vmatpush.bf16.msra.mxu3 %v3421_v31  ;;  %v3680_v0 = vld [vmem:[#allocation7 + $0x44c] sm:$0xf]  ;;  %v2813_v15 = vor.u32 %v3616_v63, %v2810_v27  ;;  %v3597_v30 = vld [vmem:[#allocation7 + $0x1ac] sm:$0xf0]  ;;  %v3265_v31 = vor.u32 %v3733_v33, %v3264_v20 }
 0x1f5   :  { %v3066_v32 = vld [vmem:[#allocation7 + $0x468] sm:$0xf0]  ;;  %v3456_v26 = vld [vmem:[#allocation7 + $0x750] sm:$0xf] }
 0x1f6   :  { %v3744_v1 = vld [vmem:[#allocation7 + $0x64c] sm:$0xf]  ;;  %v3069_v17 = vor.u32 %v3680_v0, %v3066_v32  ;;  %v2656_v59 = vld [vmem:[#allocation7 + $0x110] sm:$0xf] }
 0x1f7   :  { %2017 = vmatpush.bf16.msra.mxu0 %v2621_v44  ;;  %2030 = vmatpush.bf16.msra.mxu1 %v2877_v45  ;;  %v3322_v35 = vld [vmem:[#allocation7 + $0x668] sm:$0xf0]  ;;  %v3789_v44 = vld [vmem:[#allocation7 + $0x7ac] sm:$0xf0]  ;;  %v2721_v45 = vor.u32 %v3597_v30, %v2720_v29 }
 0x1f8   :  { %2043 = vmatpush.bf16.msra.mxu2 %v3133_v48  ;;  %2056 = vmatpush.bf16.msra.mxu3 %v3389_v49  ;;  %v3544_v2 = vld [vmem:[#allocation7 + $0xc] sm:$0xf]  ;;  %v3325_v6 = vor.u32 %v3744_v1, %v3322_v35  ;;  %v3589_v48 = vld [vmem:[#allocation7 + $0x16c] sm:$0xf0]  ;;  %v3233_v49 = vor.u32 %v3725_v41, %v3232_v39  ;;  %v3489_v51 = vor.u32 %v3789_v44, %v3488_v42 }
 0x1f9   :  { %v2522_v4 = vld [vmem:[#allocation7 + $0x28] sm:$0xf0]  ;;  %v2912_v27 = vld [vmem:[#allocation7 + $0x310] sm:$0xf] }
 0x1fa   :  { %v3608_v16 = vld [vmem:[#allocation7 + $0x20c] sm:$0xf]  ;;  %v2525_v21 = vor.u32 %v3544_v2, %v2522_v4  ;;  %v3645_v0 = vld [vmem:[#allocation7 + $0x32c] sm:$0xf0] }
 0x1fb   :  { %2018 = vmatpush.bf16.msra.mxu0 %v2589_v56  ;;  %2031 = vmatpush.bf16.msra.mxu1 %v2845_v57  ;;  %v2778_v5 = vld [vmem:[#allocation7 + $0x228] sm:$0xf0]  ;;  %v3781_v56 = vld [vmem:[#allocation7 + $0x76c] sm:$0xf0]  ;;  %v2689_v57 = vor.u32 %v3589_v48, %v2688_v47 }
 0x1fc   :  { %2044 = vmatpush.bf16.msra.mxu2 %v3101_v60  ;;  %2057 = vmatpush.bf16.msra.mxu3 %v3357_v62  ;;  %v3672_v22 = vld [vmem:[#allocation7 + $0x40c] sm:$0xf]  ;;  %v2781_v23 = vor.u32 %v3608_v16, %v2778_v5  ;;  %v3581_v60 = vld [vmem:[#allocation7 + $0x12c] sm:$0xf0]  ;;  %v3201_v62 = vor.u32 %v3717_v55, %v3200_v54  ;;  %v3457_v63 = vor.u32 %v3781_v56, %v3456_v26 }
 0x1fd   :  { %v3034_v7 = vld [vmem:[#allocation7 + $0x428] sm:$0xf0]  ;;  %v3168_v32 = vld [vmem:[#allocation7 + $0x510] sm:$0xf] }
 0x1fe   :  { %v3736_v8 = vld [vmem:[#allocation7 + $0x60c] sm:$0xf]  ;;  %v3037_v24 = vor.u32 %v3672_v22, %v3034_v7  ;;  %v3709_v1 = vld [vmem:[#allocation7 + $0x52c] sm:$0xf0] }
 0x1ff   :  { %v3290_v12 = vld [vmem:[#allocation7 + $0x628] sm:$0xf0]  ;;  %2019 = vmatpush.bf16.msra.mxu0 %v2557_v3  ;;  %2032 = vmatpush.bf16.msra.mxu1 %v2813_v15  ;;  %v3424_v35 = vld [vmem:[#allocation7 + $0x710] sm:$0xf]  ;;  %v2657_v3 = vor.u32 %v3581_v60, %v2656_v59  ;;  %v2913_v15 = vor.u32 %v3645_v0, %v2912_v27  ;;  %v3169_v5 = vor.u32 %v3709_v1, %v3168_v32  ;;  %v2754_v59 = vld [vmem:[#allocation7 + $0x1f0] sm:$0xf0] }
 0x200   :  { %2045 = vmatpush.bf16.msra.mxu2 %v3069_v17  ;;  %2058 = vmatpush.bf16.msra.mxu3 %v3325_v6  ;;  %v3293_v25 = vor.u32 %v3736_v8, %v3290_v12  ;;  %v3773_v2 = vld [vmem:[#allocation7 + $0x72c] sm:$0xf0]  ;;  %v3665_v60 = vld [vmem:[#allocation7 + $0x3d4] sm:$0xf] }
 0x201   :  { %v2624_v4 = vld [vmem:[#allocation7 + $0xd0] sm:$0xf]  ;;  %v3425_v17 = vor.u32 %v3773_v2, %v3424_v35  ;;  %v3266_v32 = vld [vmem:[#allocation7 + $0x5f0] sm:$0xf0] }
 0x202   :  { %v3573_v16 = vld [vmem:[#allocation7 + $0xec] sm:$0xf0]  ;;  %v3793_v1 = vld [vmem:[#allocation7 + $0x7d4] sm:$0xf] }
 0x203   :  { %2020 = vmatpush.bf16.msra.mxu0 %v2525_v21  ;;  %2033 = vmatpush.bf16.msra.mxu1 %v2781_v23  ;;  %v2880_v6 = vld [vmem:[#allocation7 + $0x2d0] sm:$0xf]  ;;  %v2625_v14 = vor.u32 %v3573_v16, %v2624_v4  ;;  %v3522_v35 = vld [vmem:[#allocation7 + $0x7f0] sm:$0xf0] }
 0x204   :  { %2046 = vmatpush.bf16.msra.mxu2 %v3037_v24  ;;  %2059 = vmatpush.bf16.msra.mxu3 %v3293_v25  ;;  %v3637_v22 = vld [vmem:[#allocation7 + $0x2ec] sm:$0xf0]  ;;  %v3593_v16 = vld [vmem:[#allocation7 + $0x194] sm:$0xf] }
 0x205   :  { %v3136_v7 = vld [vmem:[#allocation7 + $0x4d0] sm:$0xf]  ;;  %v2881_v18 = vor.u32 %v3637_v22, %v2880_v6  ;;  %v3525_v6 = vor.u32 %v3793_v1, %v3522_v35  ;;  %v3657_v22 = vld [vmem:[#allocation7 + $0x394] sm:$0xf] }
 0x206   :  { %2021 = vmatmul.bf16.vlgmr.msra.gmra.mxu0 %v4099_v9  ;;  %2034 = vmatmul.bf16.vlgmr.msra.gmra.mxu1 %v4101_v10  ;;  %v3701_v8 = vld [vmem:[#allocation7 + $0x4ec] sm:$0xf0]  ;;  %v2850_v1 = vld [vmem:[#allocation7 + $0x2b0] sm:$0xf0] }
 0x207   :  { %2065 = vmatpush.bf16.msrb.mxu0 %v2753_v28  ;;  %2078 = vmatpush.bf16.msrb.mxu1 %v3009_v43  ;;  %v3392_v12 = vld [vmem:[#allocation7 + $0x6d0] sm:$0xf]  ;;  %v3137_v21 = vor.u32 %v3701_v8, %v3136_v7  ;;  %v2978_v7 = vld [vmem:[#allocation7 + $0x3b0] sm:$0xf0] }
 0x208   :  { %2091 = vmatpush.bf16.msrb.mxu2 %v3265_v31  ;;  %2104 = vmatpush.bf16.msrb.mxu3 %v3521_v36  ;;  %v3765_v13 = vld [vmem:[#allocation7 + $0x6ec] sm:$0xf0]  ;;  %v3721_v8 = vld [vmem:[#allocation7 + $0x594] sm:$0xf] }
 0x209   :  { %2047 = vmatmul.bf16.vlgmr.msra.gmra.mxu2 %v4103_v50  ;;  %2060 = vmatmul.bf16.vlgmr.msra.gmra.mxu3 %v4105_v11  ;;  %v2592_v19 = vld [vmem:[#allocation7 + $0x90] sm:$0xf]  ;;  %v3393_v23 = vor.u32 %v3765_v13, %v3392_v12  ;;  %v3234_v12 = vld [vmem:[#allocation7 + $0x5b0] sm:$0xf0] }
 0x20a   :  { %v3565_v20 = vld [vmem:[#allocation7 + $0xac] sm:$0xf0]  ;;  %v3785_v13 = vld [vmem:[#allocation7 + $0x794] sm:$0xf] }
 0x20b   :  { %2066 = vmatpush.bf16.msrb.mxu0 %v2721_v45  ;;  %2079 = vmatpush.bf16.msrb.mxu1 %v2977_v46  ;;  %v2848_v33 = vld [vmem:[#allocation7 + $0x290] sm:$0xf]  ;;  %v2593_v43 = vor.u32 %v3565_v20, %v2592_v19  ;;  %v2981_v19 = vor.u32 %v3657_v22, %v2978_v7  ;;  %v3585_v20 = vld [vmem:[#allocation7 + $0x154] sm:$0xf] }
 0x20c   :  { %2092 = vmatpush.bf16.msrb.mxu2 %v3233_v49  ;;  %2105 = vmatpush.bf16.msrb.mxu3 %v3489_v51  ;;  %v3693_v24 = vld [vmem:[#allocation7 + $0x4ac] sm:$0xf0]  ;;  %v2849_v29 = vor.u32 %v3629_v34, %v2848_v33  ;;  %v3649_v34 = vld [vmem:[#allocation7 + $0x354] sm:$0xf] }
 0x20d   :  { %v3360_v25 = vld [vmem:[#allocation7 + $0x690] sm:$0xf]  ;;  %v3105_v36 = vor.u32 %v3693_v24, %v3104_v40  ;;  %v2946_v40 = vld [vmem:[#allocation7 + $0x370] sm:$0xf0] }
 0x20e   :  { %v3757_v28 = vld [vmem:[#allocation7 + $0x6ac] sm:$0xf0]  ;;  %v3713_v24 = vld [vmem:[#allocation7 + $0x554] sm:$0xf] }
 0x20f   :  { %2067 = vmatpush.bf16.msrb.mxu0 %v2689_v57  ;;  %2080 = vmatpush.bf16.msrb.mxu1 %v2945_v58  ;;  %v2560_v30 = vld [vmem:[#allocation7 + $0x50] sm:$0xf]  ;;  %v3361_v37 = vor.u32 %v3757_v28, %v3360_v25  ;;  %v3601_v58 = vld [vmem:[#allocation7 + $0x1d4] sm:$0xf] }
 0x210   :  { %2093 = vmatpush.bf16.msrb.mxu2 %v3201_v62  ;;  %2106 = vmatpush.bf16.msrb.mxu3 %v3457_v63  ;;  %v3557_v31 = vld [vmem:[#allocation7 + $0x6c] sm:$0xf0]  ;;  %v3010_v62 = vld [vmem:[#allocation7 + $0x3f0] sm:$0xf0] }
 0x211   :  { %v3621_v39 = vld [vmem:[#allocation7 + $0x26c] sm:$0xf0]  ;;  %v2561_v47 = vor.u32 %v3557_v31, %v2560_v30  ;;  %v3729_v63 = vld [vmem:[#allocation7 + $0x5d4] sm:$0xf]  ;;  %v3013_v4 = vor.u32 %v3665_v60, %v3010_v62  ;;  %v2949_v30 = vor.u32 %v3649_v34, %v2946_v40 }
 0x212   :  { %v3072_v41 = vld [vmem:[#allocation7 + $0x450] sm:$0xf]  ;;  %v2817_v48 = vor.u32 %v3621_v39, %v2816_v38  ;;  %v3202_v25 = vld [vmem:[#allocation7 + $0x570] sm:$0xf0] }
 0x213   :  { %2068 = vmatpush.bf16.msrb.mxu0 %v2657_v3  ;;  %2081 = vmatpush.bf16.msrb.mxu1 %v2913_v15  ;;  %v3685_v42 = vld [vmem:[#allocation7 + $0x46c] sm:$0xf0]  ;;  %v2757_v15 = vor.u32 %v3601_v58, %v2754_v59  ;;  %v3777_v28 = vld [vmem:[#allocation7 + $0x754] sm:$0xf] }
 0x214   :  { %2094 = vmatpush.bf16.msrb.mxu2 %v3169_v5  ;;  %2107 = vmatpush.bf16.msrb.mxu3 %v3425_v17  ;;  %v3328_v44 = vld [vmem:[#allocation7 + $0x650] sm:$0xf]  ;;  %v3073_v53 = vor.u32 %v3685_v42, %v3072_v41  ;;  %v2722_v5 = vld [vmem:[#allocation7 + $0x1b0] sm:$0xf0]  ;;  %v3269_v17 = vor.u32 %v3729_v63, %v3266_v32 }
 0x215   :  { %v3749_v45 = vld [vmem:[#allocation7 + $0x66c] sm:$0xf0]  ;;  %v3577_v31 = vld [vmem:[#allocation7 + $0x114] sm:$0xf] }
 0x216   :  { %v2528_v46 = vld [vmem:[#allocation7 + $0x10] sm:$0xf]  ;;  %v3329_v54 = vor.u32 %v3749_v45, %v3328_v44  ;;  %v3641_v39 = vld [vmem:[#allocation7 + $0x314] sm:$0xf] }
 0x217   :  { %2069 = vmatpush.bf16.msrb.mxu0 %v2625_v14  ;;  %2082 = vmatpush.bf16.msrb.mxu1 %v2881_v18  ;;  %v3549_v49 = vld [vmem:[#allocation7 + $0x2c] sm:$0xf0]  ;;  %v3490_v14 = vld [vmem:[#allocation7 + $0x7b0] sm:$0xf0]  ;;  %v2725_v18 = vor.u32 %v3593_v16, %v2722_v5 }
 0x218   :  { %2095 = vmatpush.bf16.msrb.mxu2 %v3137_v21  ;;  %2108 = vmatpush.bf16.msrb.mxu3 %v3393_v23  ;;  %v2784_v51 = vld [vmem:[#allocation7 + $0x210] sm:$0xf]  ;;  %v2529_v27 = vor.u32 %v3549_v49, %v2528_v46  ;;  %v2690_v21 = vld [vmem:[#allocation7 + $0x170] sm:$0xf0]  ;;  %v3237_v23 = vor.u32 %v3721_v8, %v3234_v12  ;;  %v3493_v33 = vor.u32 %v3785_v13, %v3490_v14 }
 0x219   :  { %v3613_v52 = vld [vmem:[#allocation7 + $0x22c] sm:$0xf0]  ;;  %v2914_v41 = vld [vmem:[#allocation7 + $0x330] sm:$0xf0] }
 0x21a   :  { %v3040_v55 = vld [vmem:[#allocation7 + $0x410] sm:$0xf]  ;;  %v2785_v0 = vor.u32 %v3613_v52, %v2784_v51  ;;  %v3705_v42 = vld [vmem:[#allocation7 + $0x514] sm:$0xf] }
 0x21b   :  { %2070 = vmatpush.bf16.msrb.mxu0 %v2593_v43  ;;  %2083 = vmatpush.bf16.msrb.mxu1 %v2849_v29  ;;  %v3677_v26 = vld [vmem:[#allocation7 + $0x42c] sm:$0xf0]  ;;  %v3458_v43 = vld [vmem:[#allocation7 + $0x770] sm:$0xf0]  ;;  %v2693_v29 = vor.u32 %v3585_v20, %v2690_v21 }
 0x21c   :  { %2096 = vmatpush.bf16.msrb.mxu2 %v3105_v36  ;;  %2109 = vmatpush.bf16.msrb.mxu3 %v3361_v37  ;;  %v3296_v56 = vld [vmem:[#allocation7 + $0x610] sm:$0xf]  ;;  %v3041_v2 = vor.u32 %v3677_v26, %v3040_v55  ;;  %v2658_v36 = vld [vmem:[#allocation7 + $0x130] sm:$0xf0]  ;;  %v3205_v37 = vor.u32 %v3713_v24, %v3202_v25  ;;  %v3461_v38 = vor.u32 %v3777_v28, %v3458_v43 }
 0x21d   :  { %v3741_v57 = vld [vmem:[#allocation7 + $0x62c] sm:$0xf0]  ;;  %v3170_v44 = vld [vmem:[#allocation7 + $0x530] sm:$0xf0] }
 0x21e   :  { %v3297_v3 = vor.u32 %v3741_v57, %v3296_v56  ;;  %v3769_v45 = vld [vmem:[#allocation7 + $0x714] sm:$0xf]  ;;  %v3173_v52 = vor.u32 %v3705_v42, %v3170_v44  ;;  %v3734_v44 = vld [vmem:[#allocation7 + $0x5f4] sm:$0xf0] }
 0x21f   :  { %2071 = vmatpush.bf16.msrb.mxu0 %v2561_v47  ;;  %2084 = vmatpush.bf16.msrb.mxu1 %v2817_v48  ;;  %v3426_v46 = vld [vmem:[#allocation7 + $0x730] sm:$0xf0]  ;;  %v2661_v47 = vor.u32 %v3577_v31, %v2658_v36  ;;  %v2917_v48 = vor.u32 %v3641_v39, %v2914_v41  ;;  %v3606_v31 = vld [vmem:[#allocation7 + $0x1f4] sm:$0xf0]  ;;  %v4127_v39 = vld [vmem:[#allocation10] sm:$0x77] }
 0x220   :  { %2097 = vmatpush.bf16.msrb.mxu2 %v3073_v53  ;;  %2110 = vmatpush.bf16.msrb.mxu3 %v3329_v54  ;;  %v3569_v49 = vld [vmem:[#allocation7 + $0xd4] sm:$0xf]  ;;  %v3429_v53 = vor.u32 %v3769_v45, %v3426_v46  ;;  %v3016_v36 = vld [vmem:[#allocation7 + $0x3d8] sm:$0xf] }
 0x221   :  { %v2626_v51 = vld [vmem:[#allocation7 + $0xf0] sm:$0xf0]  ;;  %v3528_v45 = vld [vmem:[#allocation7 + $0x7d8] sm:$0xf] }
 0x222   :  { %v3633_v54 = vld [vmem:[#allocation7 + $0x2d4] sm:$0xf]  ;;  %v2629_v59 = vor.u32 %v3569_v49, %v2626_v51  ;;  %v3798_v46 = vld [vmem:[#allocation7 + $0x7f4] sm:$0xf0] }
 0x223   :  { %2072 = vmatpush.bf16.msrb.mxu0 %v2529_v27  ;;  %2085 = vmatpush.bf16.msrb.mxu1 %v2785_v0  ;;  %v2882_v55 = vld [vmem:[#allocation7 + $0x2f0] sm:$0xf0] }
 0x224   :  { %2098 = vmatpush.bf16.msrb.mxu2 %v3041_v2  ;;  %2111 = vmatpush.bf16.msrb.mxu3 %v3297_v3  ;;  %v3697_v26 = vld [vmem:[#allocation7 + $0x4d4] sm:$0xf]  ;;  %v2885_v60 = vor.u32 %v3633_v54, %v2882_v55  ;;  %v553_v54 = vperm.slane %v4127_v39, 0 }
 0x225   :  { %v3138_v56 = vld [vmem:[#allocation7 + $0x4f0] sm:$0xf0] }
 0x226   :  { %2073 = vmatmul.bf16.vlgmr.msrb.gmra.mxu0 %v4099_v9  ;;  %2086 = vmatmul.bf16.vlgmr.msrb.gmra.mxu1 %v4101_v10  ;;  %v3761_v57 = vld [vmem:[#allocation7 + $0x6d4] sm:$0xf]  ;;  %v3141_v27 = vor.u32 %v3697_v26, %v3138_v56  ;;  %v3529_v26 = vor.u32 %v3798_v46, %v3528_v45  ;;  %v2984_v56 = vld [vmem:[#allocation7 + $0x398] sm:$0xf] }
 0x227   :  { %2117 = vmatpush.bf16.msra.mxu0 %v2757_v15  ;;  %2130 = vmatpush.bf16.msra.mxu1 %v3013_v4  ;;  %v3394_v58 = vld [vmem:[#allocation7 + $0x6f0] sm:$0xf0]  ;;  %v3400_v45 = vld [vmem:[#allocation7 + $0x6d8] sm:$0xf] }
 0x228   :  { %2143 = vmatpush.bf16.msra.mxu2 %v3269_v17  ;;  %2156 = vmatpush.bf16.msra.mxu3 %v3525_v6  ;;  %v3561_v62 = vld [vmem:[#allocation7 + $0x94] sm:$0xf]  ;;  %v3397_v0 = vor.u32 %v3761_v57, %v3394_v58  ;;  %v3662_v57 = vld [vmem:[#allocation7 + $0x3b4] sm:$0xf0] }
 0x229   :  { %2099 = vmatmul.bf16.vlgmr.msrb.gmra.mxu2 %v4103_v50  ;;  %2112 = vmatmul.bf16.vlgmr.msrb.gmra.mxu3 %v4105_v11  ;;  %v2594_v63 = vld [vmem:[#allocation7 + $0xb0] sm:$0xf0]  ;;  %v3240_v58 = vld [vmem:[#allocation7 + $0x598] sm:$0xf] }
 0x22a   :  { %v3625_v32 = vld [vmem:[#allocation7 + $0x294] sm:$0xf]  ;;  %v2597_v4 = vor.u32 %v3561_v62, %v2594_v63  ;;  %v3790_v62 = vld [vmem:[#allocation7 + $0x7b4] sm:$0xf0] }
 0x22b   :  { %2118 = vmatpush.bf16.msra.mxu0 %v2725_v18  ;;  %2131 = vmatpush.bf16.msra.mxu1 %v2981_v19  ;;  %v3689_v35 = vld [vmem:[#allocation7 + $0x494] sm:$0xf]  ;;  %v2853_v16 = vor.u32 %v3625_v32, %v2850_v1  ;;  %v3590_v32 = vld [vmem:[#allocation7 + $0x174] sm:$0xf0]  ;;  %v569_v1 = vperm.slane %v553_v54, 0 }
 0x22c   :  { %2144 = vmatpush.bf16.msra.mxu2 %v3237_v23  ;;  %2157 = vmatpush.bf16.msra.mxu3 %v3493_v33  ;;  %v3106_v2 = vld [vmem:[#allocation7 + $0x4b0] sm:$0xf0]  ;;  %v3766_v46 = vld [vmem:[#allocation7 + $0x6f4] sm:$0xf0] }
 0x22d   :  { %v3753_v3 = vld [vmem:[#allocation7 + $0x694] sm:$0xf]  ;;  %v3109_v6 = vor.u32 %v3689_v35, %v3106_v2  ;;  %v3566_v54 = vld [vmem:[#allocation7 + $0xb4] sm:$0xf0] }
 0x22e   :  { %v3362_v15 = vld [vmem:[#allocation7 + $0x6b0] sm:$0xf0] }
 0x22f   :  { %2119 = vmatpush.bf16.msra.mxu0 %v2693_v29  ;;  %2132 = vmatpush.bf16.msra.mxu1 %v2949_v30  ;;  %v3553_v5 = vld [vmem:[#allocation7 + $0x54] sm:$0xf]  ;;  %v3365_v22 = vor.u32 %v3753_v3, %v3362_v15  ;;  %v2760_v30 = vld [vmem:[#allocation7 + $0x1d8] sm:$0xf] }
 0x230   :  { %2145 = vmatpush.bf16.msra.mxu2 %v3205_v37  ;;  %2158 = vmatpush.bf16.msra.mxu3 %v3461_v38  ;;  %v2562_v17 = vld [vmem:[#allocation7 + $0x70] sm:$0xf0]  ;;  %v3670_v37 = vld [vmem:[#allocation7 + $0x3f4] sm:$0xf0]  ;;  %v2761_v49 = vor.u32 %v3606_v31, %v2760_v30 }
 0x231   :  { %v3617_v7 = vld [vmem:[#allocation7 + $0x254] sm:$0xf]  ;;  %v2565_v21 = vor.u32 %v3553_v5, %v2562_v17  ;;  %v3272_v38 = vld [vmem:[#allocation7 + $0x5d8] sm:$0xf]  ;;  %v3017_v51 = vor.u32 %v3670_v37, %v3016_v36 }
 0x232   :  { %v2818_v8 = vld [vmem:[#allocation7 + $0x270] sm:$0xf0]  ;;  %v3273_v55 = vor.u32 %v3734_v44, %v3272_v38  ;;  %v2952_v3 = vld [vmem:[#allocation7 + $0x358] sm:$0xf] }
 0x233   :  { %2120 = vmatpush.bf16.msra.mxu0 %v2661_v47  ;;  %2133 = vmatpush.bf16.msra.mxu1 %v2917_v48  ;;  %v3681_v12 = vld [vmem:[#allocation7 + $0x454] sm:$0xf]  ;;  %v2821_v23 = vor.u32 %v3617_v7, %v2818_v8  ;;  %v3654_v15 = vld [vmem:[#allocation7 + $0x374] sm:$0xf0] }
 0x234   :  { %2146 = vmatpush.bf16.msra.mxu2 %v3173_v52  ;;  %2159 = vmatpush.bf16.msra.mxu3 %v3429_v53  ;;  %v3074_v13 = vld [vmem:[#allocation7 + $0x470] sm:$0xf0]  ;;  %v2728_v52 = vld [vmem:[#allocation7 + $0x198] sm:$0xf]  ;;  %v2953_v8 = vor.u32 %v3654_v15, %v2952_v3 }
 0x235   :  { %v3745_v14 = vld [vmem:[#allocation7 + $0x654] sm:$0xf]  ;;  %v3077_v24 = vor.u32 %v3681_v12, %v3074_v13  ;;  %v3598_v53 = vld [vmem:[#allocation7 + $0x1b4] sm:$0xf0] }
 0x236   :  { %v3330_v18 = vld [vmem:[#allocation7 + $0x670] sm:$0xf0]  ;;  %v2729_v63 = vor.u32 %v3598_v53, %v2728_v52  ;;  %v3464_v5 = vld [vmem:[#allocation7 + $0x758] sm:$0xf] }
 0x237   :  { %2121 = vmatpush.bf16.msra.mxu0 %v2629_v59  ;;  %2134 = vmatpush.bf16.msra.mxu1 %v2885_v60  ;;  %v3545_v19 = vld [vmem:[#allocation7 + $0x14] sm:$0xf]  ;;  %v3333_v25 = vor.u32 %v3745_v14, %v3330_v18  ;;  %v3726_v59 = vld [vmem:[#allocation7 + $0x5b4] sm:$0xf0] }
 0x238   :  { %2147 = vmatpush.bf16.msra.mxu2 %v3141_v27  ;;  %2160 = vmatpush.bf16.msra.mxu3 %v3397_v0  ;;  %v2530_v20 = vld [vmem:[#allocation7 + $0x30] sm:$0xf0]  ;;  %v3496_v60 = vld [vmem:[#allocation7 + $0x798] sm:$0xf]  ;;  %v2985_v27 = vor.u32 %v3662_v57, %v2984_v56  ;;  %v3241_v35 = vor.u32 %v3726_v59, %v3240_v58  ;;  %v3401_v57 = vor.u32 %v3766_v46, %v3400_v45  ;;  %v3794_v45 = vld [vmem:[#allocation7 + $0x7dc] sm:$0xf] }
 0x239   :  { %v3609_v33 = vld [vmem:[#allocation7 + $0x214] sm:$0xf]  ;;  %v2533_v41 = vor.u32 %v3545_v19, %v2530_v20  ;;  %v2696_v0 = vld [vmem:[#allocation7 + $0x158] sm:$0xf]  ;;  %v3497_v2 = vor.u32 %v3790_v62, %v3496_v60  ;;  %v3530_v46 = vld [vmem:[#allocation7 + $0x7f8] sm:$0xf0] }
 0x23a   :  { %v2786_v34 = vld [vmem:[#allocation7 + $0x230] sm:$0xf0]  ;;  %v3782_v17 = vld [vmem:[#allocation7 + $0x774] sm:$0xf0]  ;;  %v2697_v7 = vor.u32 %v3590_v32, %v2696_v0 }
 0x23b   :  { %2122 = vmatpush.bf16.msra.mxu0 %v2597_v4  ;;  %2135 = vmatpush.bf16.msra.mxu1 %v2853_v16  ;;  %v3673_v40 = vld [vmem:[#allocation7 + $0x414] sm:$0xf]  ;;  %v2789_v42 = vor.u32 %v3609_v33, %v2786_v34  ;;  %v3208_v4 = vld [vmem:[#allocation7 + $0x558] sm:$0xf]  ;;  %v3465_v19 = vor.u32 %v3782_v17, %v3464_v5 }
 0x23c   :  { %2148 = vmatpush.bf16.msra.mxu2 %v3109_v6  ;;  %2161 = vmatpush.bf16.msra.mxu3 %v3365_v22  ;;  %v3042_v28 = vld [vmem:[#allocation7 + $0x430] sm:$0xf0]  ;;  %v3718_v16 = vld [vmem:[#allocation7 + $0x574] sm:$0xf0] }
 0x23d   :  { %v3737_v43 = vld [vmem:[#allocation7 + $0x614] sm:$0xf]  ;;  %v3045_v47 = vor.u32 %v3673_v40, %v3042_v28  ;;  %v2664_v13 = vld [vmem:[#allocation7 + $0x118] sm:$0xf]  ;;  %v3209_v18 = vor.u32 %v3718_v16, %v3208_v4 }
 0x23e   :  { %v3298_v29 = vld [vmem:[#allocation7 + $0x630] sm:$0xf0]  ;;  %v3582_v14 = vld [vmem:[#allocation7 + $0x134] sm:$0xf0] }
 0x23f   :  { %2123 = vmatpush.bf16.msra.mxu0 %v2565_v21  ;;  %2136 = vmatpush.bf16.msra.mxu1 %v2821_v23  ;;  %v3301_v48 = vor.u32 %v3737_v43, %v3298_v29  ;;  %v2920_v20 = vld [vmem:[#allocation7 + $0x318] sm:$0xf] }
 0x240   :  { %2149 = vmatpush.bf16.msra.mxu2 %v3077_v24  ;;  %2162 = vmatpush.bf16.msra.mxu3 %v3333_v25  ;;  %v3646_v21 = vld [vmem:[#allocation7 + $0x334] sm:$0xf0]  ;;  %v2665_v25 = vor.u32 %v3582_v14, %v2664_v13 }
 0x241   :  { %v3176_v23 = vld [vmem:[#allocation7 + $0x518] sm:$0xf]  ;;  %v2921_v28 = vor.u32 %v3646_v21, %v2920_v20 }
 0x242   :  { %v1866_v6 = vpop.f32.mrf.mxu0  ;;  %v1879_v22 = vpop.f32.mrf.mxu1  ;;  %v3710_v34 = vld [vmem:[#allocation7 + $0x534] sm:$0xf0] }
 0x243   :  { %2124 = vmatpush.bf16.msra.mxu0 %v2533_v41  ;;  %2137 = vmatpush.bf16.msra.mxu1 %v2789_v42  ;;  %v1867_v12 = vadd.f32 %v1866_v6, %v569_v1  ;;  %v3432_v40 = vld [vmem:[#allocation7 + $0x718] sm:$0xf]  ;;  %v3177_v30 = vor.u32 %v3710_v34, %v3176_v23 }
 0x244   :  { %2150 = vmatpush.bf16.msra.mxu2 %v3045_v47  ;;  %2163 = vmatpush.bf16.msra.mxu3 %v3301_v48  ;;  %v3774_v24 = vld [vmem:[#allocation7 + $0x734] sm:$0xf0] }
 0x245   :  { %v1880_v33 = vadd.f32 %v1879_v22, %v1867_v12  ;;  %v2632_v43 = vld [vmem:[#allocation7 + $0xd8] sm:$0xf]  ;;  %v3433_v31 = vor.u32 %v3774_v24, %v3432_v40 }
 0x246   :  { %2125 = vmatmul.bf16.vlgmr.msra.gmra.mxu0 %v4099_v9  ;;  %2138 = vmatmul.bf16.vlgmr.msra.gmra.mxu1 %v4101_v10  ;;  %v3574_v29 = vld [vmem:[#allocation7 + $0xf4] sm:$0xf0] }
 0x247   :  { %2169 = vmatpush.bf16.msrb.mxu0 %v2761_v49  ;;  %2182 = vmatpush.bf16.msrb.mxu1 %v3017_v51  ;;  %v2888_v36 = vld [vmem:[#allocation7 + $0x2d8] sm:$0xf]  ;;  %v2633_v51 = vor.u32 %v3574_v29, %v2632_v43 }
 0x248   :  { %2195 = vmatpush.bf16.msrb.mxu2 %v3273_v55  ;;  %2208 = vmatpush.bf16.msrb.mxu3 %v3529_v26  ;;  %v3638_v37 = vld [vmem:[#allocation7 + $0x2f4] sm:$0xf0]  ;;  %v554_v55 = vperm.slane %v4127_v39, 4 }
 0x249   :  { %2151 = vmatmul.bf16.vlgmr.msra.gmra.mxu2 %v4103_v50  ;;  %2164 = vmatmul.bf16.vlgmr.msra.gmra.mxu3 %v4105_v11  ;;  %v3144_v38 = vld [vmem:[#allocation7 + $0x4d8] sm:$0xf]  ;;  %v1892_v41 = vpop.f32.mrf.mxu2  ;;  %v1905_v42 = vpop.f32.mrf.mxu3  ;;  %v2889_v52 = vor.u32 %v3638_v37, %v2888_v36  ;;  %v3666_v36 = vld [vmem:[#allocation7 + $0x3dc] sm:$0xf] }
 0x24a   :  { %v3702_v44 = vld [vmem:[#allocation7 + $0x4f4] sm:$0xf0]  ;;  %v1893_v47 = vadd.f32 %v1892_v41, %v1880_v33  ;;  %v1868_v48 = vpop.f32.mrf.mxu0  ;;  %v1881_v49 = vpop.f32.mrf.mxu1  ;;  %v3018_v37 = vld [vmem:[#allocation7 + $0x3f8] sm:$0xf0] }
 0x24b   :  { %2170 = vmatpush.bf16.msrb.mxu0 %v2729_v63  ;;  %2183 = vmatpush.bf16.msrb.mxu1 %v2985_v27  ;;  %v2600_v53 = vld [vmem:[#allocation7 + $0x98] sm:$0xf]  ;;  %v3145_v56 = vor.u32 %v3702_v44, %v3144_v38  ;;  %v3730_v38 = vld [vmem:[#allocation7 + $0x5dc] sm:$0xf] }
 0x24c   :  { %2196 = vmatpush.bf16.msrb.mxu2 %v3241_v35  ;;  %2209 = vmatpush.bf16.msrb.mxu3 %v3497_v2  ;;  %v4135_v26 = vadd.f32 %v1905_v42, %v1893_v47  ;;  %v2856_v58 = vld [vmem:[#allocation7 + $0x298] sm:$0xf]  ;;  %v2601_v0 = vor.u32 %v3566_v54, %v2600_v53  ;;  %v570_v2 = vperm.slane %v554_v55, 0  ;;  %v3274_v44 = vld [vmem:[#allocation7 + $0x5f8] sm:$0xf0] }
 0x24d   :  { %v3630_v59 = vld [vmem:[#allocation7 + $0x2b4] sm:$0xf0]  ;;  %v3594_v54 = vld [vmem:[#allocation7 + $0x19c] sm:$0xf] }
 0x24e   :  { %v3112_v60 = vld [vmem:[#allocation7 + $0x498] sm:$0xf]  ;;  %v2857_v32 = vor.u32 %v3630_v59, %v2856_v58  ;;  %v2730_v55 = vld [vmem:[#allocation7 + $0x1b8] sm:$0xf0]  ;;  %v3533_v58 = vor.u32 %v3794_v45, %v3530_v46 }
 0x24f   :  { %2171 = vmatpush.bf16.msrb.mxu0 %v2697_v7  ;;  %2184 = vmatpush.bf16.msrb.mxu1 %v2953_v8  ;;  %v3694_v62 = vld [vmem:[#allocation7 + $0x4b4] sm:$0xf0]  ;;  %v2634_v45 = vld [vmem:[#allocation7 + $0xf8] sm:$0xf0] }
 0x250   :  { %2197 = vmatpush.bf16.msrb.mxu2 %v3209_v18  ;;  %2210 = vmatpush.bf16.msrb.mxu3 %v3465_v19  ;;  %v3368_v63 = vld [vmem:[#allocation7 + $0x698] sm:$0xf]  ;;  %v3113_v3 = vor.u32 %v3694_v62, %v3112_v60 }
 0x251   :  { %v3758_v27 = vld [vmem:[#allocation7 + $0x6b4] sm:$0xf0]  ;;  %v1894_v17 = vpop.f32.mrf.mxu2  ;;  %v1907_v6 = vpop.f32.mrf.mxu3 }
 0x252   :  { %v2568_v1 = vld [vmem:[#allocation7 + $0x58] sm:$0xf]  ;;  %v3369_v15 = vor.u32 %v3758_v27, %v3368_v63  ;;  %v1918_v12 = vpop.f32.mrf.mxu0  ;;  %v1931_v13 = vpop.f32.mrf.mxu1  ;;  %v2986_v63 = vld [vmem:[#allocation7 + $0x3b8] sm:$0xf0] }
 0x253   :  { %2172 = vmatpush.bf16.msrb.mxu0 %v2665_v25  ;;  %2185 = vmatpush.bf16.msrb.mxu1 %v2921_v28  ;;  %v3558_v35 = vld [vmem:[#allocation7 + $0x74] sm:$0xf0]  ;;  %v1919_v20 = vadd.f32 %v1918_v12, %v570_v2  ;;  %v3722_v27 = vld [vmem:[#allocation7 + $0x59c] sm:$0xf] }
 0x254   :  { %2198 = vmatpush.bf16.msrb.mxu2 %v3177_v30  ;;  %2211 = vmatpush.bf16.msrb.mxu3 %v3433_v31  ;;  %v2824_v4 = vld [vmem:[#allocation7 + $0x258] sm:$0xf]  ;;  %v2569_v18 = vor.u32 %v3558_v35, %v2568_v1  ;;  %v3602_v30 = vld [vmem:[#allocation7 + $0x1dc] sm:$0xf] }
 0x255   :  { %v3622_v16 = vld [vmem:[#allocation7 + $0x274] sm:$0xf0]  ;;  %v1932_v43 = vadd.f32 %v1931_v13, %v1919_v20  ;;  %v2762_v31 = vld [vmem:[#allocation7 + $0x1f8] sm:$0xf0] }
 0x256   :  { %v3080_v5 = vld [vmem:[#allocation7 + $0x458] sm:$0xf]  ;;  %v2825_v19 = vor.u32 %v3622_v16, %v2824_v4  ;;  %v2765_v49 = vor.u32 %v3602_v30, %v2762_v31  ;;  %v3786_v1 = vld [vmem:[#allocation7 + $0x79c] sm:$0xf] }
 0x257   :  { %2173 = vmatpush.bf16.msrb.mxu0 %v2633_v51  ;;  %2186 = vmatpush.bf16.msrb.mxu1 %v2889_v52  ;;  %v3686_v22 = vld [vmem:[#allocation7 + $0x474] sm:$0xf0]  ;;  %v3021_v51 = vor.u32 %v3666_v36, %v3018_v37  ;;  %v3498_v35 = vld [vmem:[#allocation7 + $0x7b8] sm:$0xf0] }
 0x258   :  { %2199 = vmatpush.bf16.msrb.mxu2 %v3145_v56  ;;  %2212 = vmatpush.bf16.msrb.mxu3 %v3401_v57  ;;  %v3336_v7 = vld [vmem:[#allocation7 + $0x658] sm:$0xf]  ;;  %v3081_v34 = vor.u32 %v3686_v22, %v3080_v5  ;;  %v3658_v56 = vld [vmem:[#allocation7 + $0x39c] sm:$0xf]  ;;  %v3277_v57 = vor.u32 %v3730_v38, %v3274_v44  ;;  %v3501_v6 = vor.u32 %v3786_v1, %v3498_v35 }
 0x259   :  { %v3750_v8 = vld [vmem:[#allocation7 + $0x674] sm:$0xf0]  ;;  %v1944_v52 = vpop.f32.mrf.mxu2  ;;  %v1957_v53 = vpop.f32.mrf.mxu3  ;;  %v3586_v4 = vld [vmem:[#allocation7 + $0x15c] sm:$0xf] }
 0x25a   :  { %v2536_v14 = vld [vmem:[#allocation7 + $0x18] sm:$0xf]  ;;  %v3337_v40 = vor.u32 %v3750_v8, %v3336_v7  ;;  %v1945_v59 = vadd.f32 %v1944_v52, %v1932_v43  ;;  %v1920_v60 = vpop.f32.mrf.mxu0  ;;  %v1933_v62 = vpop.f32.mrf.mxu1  ;;  %v2698_v16 = vld [vmem:[#allocation7 + $0x178] sm:$0xf0] }
 0x25b   :  { %2174 = vmatpush.bf16.msrb.mxu0 %v2601_v0  ;;  %2187 = vmatpush.bf16.msrb.mxu1 %v2857_v32  ;;  %v3550_v21 = vld [vmem:[#allocation7 + $0x34] sm:$0xf0]  ;;  %v4137_v0 = vld [vmem:[#allocation10 + $0x8] sm:$0x77]  ;;  %v3242_v32 = vld [vmem:[#allocation7 + $0x5b8] sm:$0xf0] }
 0x25c   :  { %v2792_v23 = vld [vmem:[#allocation7 + $0x218] sm:$0xf]  ;;  %2200 = vmatpush.bf16.msrb.mxu2 %v3113_v3  ;;  %2213 = vmatpush.bf16.msrb.mxu3 %v3369_v15  ;;  %v2537_v41 = vor.u32 %v3550_v21, %v2536_v14  ;;  %v4139_v2 = vadd.f32 %v1957_v53, %v1945_v59  ;;  %v2733_v3 = vor.u32 %v3594_v54, %v2730_v55  ;;  %v555_v5 = vperm.slane %v4137_v0, 0  ;;  %v3650_v22 = vld [vmem:[#allocation7 + $0x35c] sm:$0xf] }
 0x25d   :  { %v3614_v33 = vld [vmem:[#allocation7 + $0x234] sm:$0xf0]  ;;  %v2989_v15 = vor.u32 %v3658_v56, %v2986_v63  ;;  %v3245_v17 = vor.u32 %v3722_v27, %v3242_v32  ;;  %v2954_v7 = vld [vmem:[#allocation7 + $0x378] sm:$0xf0] }
 0x25e   :  { %v3048_v24 = vld [vmem:[#allocation7 + $0x418] sm:$0xf]  ;;  %v2793_v42 = vor.u32 %v3614_v33, %v2792_v23  ;;  %v3714_v8 = vld [vmem:[#allocation7 + $0x55c] sm:$0xf]  ;;  %v571_v23 = vperm.slane %v555_v5, 0 }
 0x25f   :  { %v3678_v25 = vld [vmem:[#allocation7 + $0x434] sm:$0xf0]  ;;  %2175 = vmatpush.bf16.msrb.mxu0 %v2569_v18  ;;  %2188 = vmatpush.bf16.msrb.mxu1 %v2825_v19  ;;  %v3210_v12 = vld [vmem:[#allocation7 + $0x578] sm:$0xf0]  ;;  %v2701_v18 = vor.u32 %v3586_v4, %v2698_v16  ;;  %v2957_v19 = vor.u32 %v3650_v22, %v2954_v7 }
 0x260   :  { %v3304_v28 = vld [vmem:[#allocation7 + $0x618] sm:$0xf]  ;;  %2201 = vmatpush.bf16.msrb.mxu2 %v3081_v34  ;;  %2214 = vmatpush.bf16.msrb.mxu3 %v3337_v40  ;;  %v3049_v47 = vor.u32 %v3678_v25, %v3048_v24  ;;  %v3778_v13 = vld [vmem:[#allocation7 + $0x75c] sm:$0xf]  ;;  %v3213_v40 = vor.u32 %v3714_v8, %v3210_v12 }
 0x261   :  { %v3742_v29 = vld [vmem:[#allocation7 + $0x634] sm:$0xf0]  ;;  %v3466_v14 = vld [vmem:[#allocation7 + $0x778] sm:$0xf0]  ;;  %v1946_v20 = vpop.f32.mrf.mxu2  ;;  %v1959_v21 = vpop.f32.mrf.mxu3 }
 0x262   :  { %v3305_v48 = vor.u32 %v3742_v29, %v3304_v28  ;;  %v3578_v33 = vld [vmem:[#allocation7 + $0x11c] sm:$0xf]  ;;  %v3469_v24 = vor.u32 %v3778_v13, %v3466_v14 }
 0x263   :  { %2176 = vmatpush.bf16.msrb.mxu0 %v2537_v41  ;;  %2189 = vmatpush.bf16.msrb.mxu1 %v2793_v42  ;;  %v2666_v34 = vld [vmem:[#allocation7 + $0x138] sm:$0xf0]  ;;  %v1970_v36 = vpop.f32.mrf.mxu0  ;;  %v1983_v37 = vpop.f32.mrf.mxu1 }
 0x264   :  { %2202 = vmatpush.bf16.msrb.mxu2 %v3049_v47  ;;  %2215 = vmatpush.bf16.msrb.mxu3 %v3305_v48  ;;  %v3642_v25 = vld [vmem:[#allocation7 + $0x31c] sm:$0xf]  ;;  %v1971_v38 = vadd.f32 %v1970_v36, %v571_v23  ;;  %v2669_v41 = vor.u32 %v3578_v33, %v2666_v34 }
 0x265   :  { %v2922_v28 = vld [vmem:[#allocation7 + $0x338] sm:$0xf0] }
 0x266   :  { %2177 = vmatmul.bf16.vlgmr.msrb.gmra.mxu0 %v4099_v9  ;;  %2190 = vmatmul.bf16.vlgmr.msrb.gmra.mxu1 %v4101_v10  ;;  %v3706_v43 = vld [vmem:[#allocation7 + $0x51c] sm:$0xf]  ;;  %v2925_v42 = vor.u32 %v3642_v25, %v2922_v28  ;;  %v1984_v52 = vadd.f32 %v1983_v37, %v1971_v38 }
 0x267   :  { %2221 = vmatpush.bf16.msra.mxu0 %v2765_v49  ;;  %2234 = vmatpush.bf16.msra.mxu1 %v3021_v51  ;;  %v3178_v29 = vld [vmem:[#allocation7 + $0x538] sm:$0xf0] }
 0x268   :  { %2247 = vmatpush.bf16.msra.mxu2 %v3277_v57  ;;  %2260 = vmatpush.bf16.msra.mxu3 %v3533_v58  ;;  %v3770_v30 = vld [vmem:[#allocation7 + $0x71c] sm:$0xf]  ;;  %v3181_v46 = vor.u32 %v3706_v43, %v3178_v29 }
 0x269   :  { %2203 = vmatmul.bf16.vlgmr.msrb.gmra.mxu2 %v4103_v50  ;;  %2216 = vmatmul.bf16.vlgmr.msrb.gmra.mxu3 %v4105_v11  ;;  %v3434_v31 = vld [vmem:[#allocation7 + $0x738] sm:$0xf0] }
 0x26a   :  { %v3570_v44 = vld [vmem:[#allocation7 + $0xdc] sm:$0xf]  ;;  %v3437_v47 = vor.u32 %v3770_v30, %v3434_v31 }
 0x26b   :  { %2222 = vmatpush.bf16.msra.mxu0 %v2733_v3  ;;  %2235 = vmatpush.bf16.msra.mxu1 %v2989_v15  ;;  %v3634_v48 = vld [vmem:[#allocation7 + $0x2dc] sm:$0xf]  ;;  %v2637_v56 = vor.u32 %v3570_v44, %v2634_v45  ;;  %v1972_v5 = vpop.f32.mrf.mxu0 }
 0x26c   :  { %2248 = vmatpush.bf16.msra.mxu2 %v3245_v17  ;;  %2261 = vmatpush.bf16.msra.mxu3 %v3501_v6  ;;  %v2890_v49 = vld [vmem:[#allocation7 + $0x2f8] sm:$0xf0]  ;;  %v1996_v1 = vpop.f32.mrf.mxu2  ;;  %v2009_v35 = vpop.f32.mrf.mxu3 }
 0x26d   :  { %v3698_v51 = vld [vmem:[#allocation7 + $0x4dc] sm:$0xf]  ;;  %v2893_v57 = vor.u32 %v3634_v48, %v2890_v49  ;;  %v1997_v16 = vadd.f32 %v1996_v1, %v1984_v52  ;;  %v1985_v17 = vpop.f32.mrf.mxu1  ;;  %v556_v48 = vperm.slane %v4137_v0, 4 }
 0x26e   :  { %v3146_v53 = vld [vmem:[#allocation7 + $0x4f8] sm:$0xf0] }
 0x26f   :  { %2223 = vmatpush.bf16.msra.mxu0 %v2701_v18  ;;  %2236 = vmatpush.bf16.msra.mxu1 %v2957_v19  ;;  %v3762_v54 = vld [vmem:[#allocation7 + $0x6dc] sm:$0xf]  ;;  %v3149_v60 = vor.u32 %v3698_v51, %v3146_v53  ;;  %v4146_v12 = vadd.f32 %v2009_v35, %v1997_v16  ;;  %v572_v49 = vperm.slane %v556_v48, 0 }
 0x270   :  { %2249 = vmatpush.bf16.msra.mxu2 %v3213_v40  ;;  %2262 = vmatpush.bf16.msra.mxu3 %v3469_v24  ;;  %v3402_v55 = vld [vmem:[#allocation7 + $0x6f8] sm:$0xf0] }
 0x271   :  { %v3562_v58 = vld [vmem:[#allocation7 + $0x9c] sm:$0xf]  ;;  %v3405_v62 = vor.u32 %v3762_v54, %v3402_v55 }
 0x272   :  { %v2602_v59 = vld [vmem:[#allocation7 + $0xb8] sm:$0xf0] }
 0x273   :  { %2224 = vmatpush.bf16.msra.mxu0 %v2669_v41  ;;  %2237 = vmatpush.bf16.msra.mxu1 %v2925_v42  ;;  %v3626_v63 = vld [vmem:[#allocation7 + $0x29c] sm:$0xf]  ;;  %v2605_v6 = vor.u32 %v3562_v58, %v2602_v59 }
 0x274   :  { %2250 = vmatpush.bf16.msra.mxu2 %v3181_v46  ;;  %2263 = vmatpush.bf16.msra.mxu3 %v3437_v47  ;;  %v2858_v27 = vld [vmem:[#allocation7 + $0x2b8] sm:$0xf0]  ;;  %v1998_v36 = vpop.f32.mrf.mxu2  ;;  %v2011_v37 = vpop.f32.mrf.mxu3 }
 0x275   :  { %v3690_v32 = vld [vmem:[#allocation7 + $0x49c] sm:$0xf]  ;;  %v2861_v22 = vor.u32 %v3626_v63, %v2858_v27  ;;  %v4155_v63 = vld [vmem:[#allocation10 + $0x10] sm:$0x77] }
 0x276   :  { %v3114_v3 = vld [vmem:[#allocation7 + $0x4b8] sm:$0xf0] }
 0x277   :  { %v3754_v15 = vld [vmem:[#allocation7 + $0x69c] sm:$0xf]  ;;  %2225 = vmatpush.bf16.msra.mxu0 %v2637_v56  ;;  %2238 = vmatpush.bf16.msra.mxu1 %v2893_v57  ;;  %v3117_v13 = vor.u32 %v3690_v32, %v3114_v3 }
 0x278   :  { %v3370_v4 = vld [vmem:[#allocation7 + $0x6b8] sm:$0xf0]  ;;  %2251 = vmatpush.bf16.msra.mxu2 %v3149_v60  ;;  %2264 = vmatpush.bf16.msra.mxu3 %v3405_v62 }
 0x279   :  { %v3554_v7 = vld [vmem:[#allocation7 + $0x5c] sm:$0xf]  ;;  %v3373_v14 = vor.u32 %v3754_v15, %v3370_v4 }
 0x27a   :  { %v2570_v8 = vld [vmem:[#allocation7 + $0x78] sm:$0xf0] }
 0x27b   :  { %v3618_v18 = vld [vmem:[#allocation7 + $0x25c] sm:$0xf]  ;;  %2226 = vmatpush.bf16.msra.mxu0 %v2605_v6  ;;  %2239 = vmatpush.bf16.msra.mxu1 %v2861_v22  ;;  %v2573_v34 = vor.u32 %v3554_v7, %v2570_v8 }
 0x27c   :  { %v2826_v19 = vld [vmem:[#allocation7 + $0x278] sm:$0xf0]  ;;  %2252 = vmatpush.bf16.msra.mxu2 %v3117_v13  ;;  %2265 = vmatpush.bf16.msra.mxu3 %v3373_v14 }
 0x27d   :  { %v3682_v20 = vld [vmem:[#allocation7 + $0x45c] sm:$0xf]  ;;  %v2829_v40 = vor.u32 %v3618_v18, %v2826_v19 }
 0x27e   :  { %v3082_v21 = vld [vmem:[#allocation7 + $0x478] sm:$0xf0] }
 0x27f   :  { %v3746_v23 = vld [vmem:[#allocation7 + $0x65c] sm:$0xf]  ;;  %v3085_v28 = vor.u32 %v3682_v20, %v3082_v21  ;;  %2227 = vmatpush.bf16.msra.mxu0 %v2573_v34  ;;  %2240 = vmatpush.bf16.msra.mxu1 %v2829_v40 }
 0x280   :  { %v3338_v33 = vld [vmem:[#allocation7 + $0x678] sm:$0xf0] }
 0x281   :  { %v3546_v24 = vld [vmem:[#allocation7 + $0x1c] sm:$0xf]  ;;  %v3341_v43 = vor.u32 %v3746_v23, %v3338_v33  ;;  %2253 = vmatpush.bf16.msra.mxu2 %v3085_v28  ;;  %v558_v28 = vperm.slane %v4155_v63, 4 }
 0x282   :  { %v2538_v25 = vld [vmem:[#allocation7 + $0x38] sm:$0xf0] }
 0x283   :  { %v3610_v29 = vld [vmem:[#allocation7 + $0x21c] sm:$0xf]  ;;  %v2541_v44 = vor.u32 %v3546_v24, %v2538_v25  ;;  %2266 = vmatpush.bf16.msra.mxu3 %v3341_v43  ;;  %v2022_v51 = vpop.f32.mrf.mxu0  ;;  %v2035_v52 = vpop.f32.mrf.mxu1 }
 0x284   :  { %v2794_v30 = vld [vmem:[#allocation7 + $0x238] sm:$0xf0]  ;;  %v2023_v53 = vadd.f32 %v2022_v51, %v572_v49 }
 0x285   :  { %v3674_v31 = vld [vmem:[#allocation7 + $0x41c] sm:$0xf]  ;;  %v2797_v45 = vor.u32 %v3610_v29, %v2794_v30  ;;  %2228 = vmatpush.bf16.msra.mxu0 %v2541_v44 }
 0x286   :  { %v3050_v38 = vld [vmem:[#allocation7 + $0x438] sm:$0xf0]  ;;  %v2036_v54 = vadd.f32 %v2035_v52, %v2023_v53 }
 0x287   :  { %v3738_v41 = vld [vmem:[#allocation7 + $0x61c] sm:$0xf]  ;;  %v3053_v46 = vor.u32 %v3674_v31, %v3050_v38  ;;  %2241 = vmatpush.bf16.msra.mxu1 %v2797_v45  ;;  %v574_v31 = vperm.slane %v558_v28, 0 }
 0x288   :  { %v3306_v42 = vld [vmem:[#allocation7 + $0x638] sm:$0xf0]  ;;  %2229 = vmatmul.bf16.vlgmr.msra.gmra.mxu0 %v4099_v9 }
 0x289   :  { %v3309_v47 = vor.u32 %v3738_v41, %v3306_v42  ;;  %2254 = vmatpush.bf16.msra.mxu2 %v3053_v46  ;;  %v4158_v25 = vld [vmem:[#allocation10 + $0x18] sm:$0x77] }
 0x28a   :  { %2242 = vmatmul.bf16.vlgmr.msra.gmra.mxu1 %v4101_v10  ;;  %v557_v10 = vperm.slane %v4155_v63, 0  ;;  %v559_v30 = vperm.slane %v4158_v25, 0  ;;  %v560_v38 = vperm.slane %v4158_v25, 4 }
 0x28b   :  { %2267 = vmatpush.bf16.msra.mxu3 %v3309_v47  ;;  %v2024_v58 = vpop.f32.mrf.mxu0  ;;  %v2037_v59 = vpop.f32.mrf.mxu1 }
 0x28c   :  { %2255 = vmatmul.bf16.vlgmr.msra.gmra.mxu2 %v4103_v50  ;;  %v2048_v55 = vpop.f32.mrf.mxu2  ;;  %v2061_v56 = vpop.f32.mrf.mxu3  ;;  %v573_v50 = vperm.slane %v557_v10, 0  ;;  %v575_v36 = vperm.slane %v559_v30, 0  ;;  %v576_v44 = vperm.slane %v560_v38, 0 }
 0x28d   :  { %v2049_v57 = vadd.f32 %v2048_v55, %v2036_v54 }
 0x28e   :  { %2268 = vmatmul.bf16.vlgmr.msra.gmra.mxu3 %v4105_v11 }
 0x28f   :  { %v4153_v60 = vadd.f32 %v2061_v56, %v2049_v57 }
 0x294   :  { %v2050_v62 = vpop.f32.mrf.mxu2  ;;  %v2063_v9 = vpop.f32.mrf.mxu3 }
 0x2a3   :  { %v2074_v11 = vpop.f32.mrf.mxu0  ;;  %v2087_v27 = vpop.f32.mrf.mxu1 }
 0x2a4   :  { %v2075_v32 = vadd.f32 %v2074_v11, %v573_v50 }
 0x2a6   :  { %v2088_v1 = vadd.f32 %v2087_v27, %v2075_v32  ;;  %v2273_v32 = vadd.f32 %v4139_v2, %v4135_v26 }
 0x2ab   :  { %v2076_v4 = vpop.f32.mrf.mxu0  ;;  %v2089_v16 = vpop.f32.mrf.mxu1 }
 0x2ac   :  { %v2100_v35 = vpop.f32.mrf.mxu2  ;;  %v2113_v3 = vpop.f32.mrf.mxu3 }
 0x2ad   :  { %v2101_v15 = vadd.f32 %v2100_v35, %v2088_v1  ;;  %v2274_v1 = vadd.f32 %v2273_v32, %v4146_v12 }
 0x2af   :  { %v2114_v5 = vadd.f32 %v2113_v3, %v2101_v15  ;;  %v2275_v35 = vadd.f32 %v2274_v1, %v4153_v60  ;;  %v4225_v1 = vld [vmem:[#allocation8 + $0x10] sm:$0x1f] }
 0x2b4   :  { %v2102_v17 = vpop.f32.mrf.mxu2  ;;  %v2115_v6 = vpop.f32.mrf.mxu3 }
 0x2c3   :  { %v2126_v22 = vpop.f32.mrf.mxu0  ;;  %v2139_v7 = vpop.f32.mrf.mxu1 }
 0x2c4   :  { %v2127_v37 = vadd.f32 %v2126_v22, %v574_v31 }
 0x2c6   :  { %v2140_v42 = vadd.f32 %v2139_v7, %v2127_v37 }
 0x2cb   :  { %v2128_v14 = vpop.f32.mrf.mxu0  ;;  %v2141_v18 = vpop.f32.mrf.mxu1 }
 0x2cc   :  { %v2152_v8 = vpop.f32.mrf.mxu2  ;;  %v2165_v13 = vpop.f32.mrf.mxu3 }
 0x2cd   :  { %v2153_v45 = vadd.f32 %v2152_v8, %v2140_v42  ;;  %v2379_v42 = vperm.slane %v4155_v63, 1 }
 0x2cf   :  { %v2166_v52 = vadd.f32 %v2165_v13, %v2153_v45  ;;  %v2381_v45 = vperm.slane %v4158_v25, 1 }
 0x2d1   :  { %v2344_v57 = vadd.f32 %v2166_v52, %v2114_v5 }
 0x2d4   :  { %v2154_v19 = vpop.f32.mrf.mxu2  ;;  %v2167_v20 = vpop.f32.mrf.mxu3 }
 0x2e3   :  { %v2178_v21 = vpop.f32.mrf.mxu0  ;;  %v2191_v23 = vpop.f32.mrf.mxu1 }
 0x2e4   :  { %v2179_v41 = vadd.f32 %v2178_v21, %v575_v36 }
 0x2e6   :  { %v2192_v46 = vadd.f32 %v2191_v23, %v2179_v41 }
 0x2eb   :  { %v2180_v40 = vpop.f32.mrf.mxu0  ;;  %v2193_v24 = vpop.f32.mrf.mxu1 }
 0x2ec   :  { %v2204_v33 = vpop.f32.mrf.mxu2  ;;  %v2217_v34 = vpop.f32.mrf.mxu3 }
 0x2ed   :  { %v2205_v49 = vadd.f32 %v2204_v33, %v2192_v46 }
 0x2ef   :  { %v2218_v53 = vadd.f32 %v2217_v34, %v2205_v49  ;;  %v2396_v49 = vperm.slane %v4155_v63, 6 }
 0x2f1   :  { %v2345_v10 = vadd.f32 %v2344_v57, %v2218_v53 }
 0x2f4   :  { %v2206_v43 = vpop.f32.mrf.mxu2  ;;  %v2219_v29 = vpop.f32.mrf.mxu3 }
 0x305   :  { %v2230_v47 = vpop.f32.mrf.mxu0 }
 0x306   :  { %v2231_v51 = vadd.f32 %v2230_v47, %v576_v44  ;;  %v2380_v44 = vperm.slane %v4155_v63, 5  ;;  %v2382_v47 = vperm.slane %v4158_v25, 5 }
 0x307   :  { %v2243_v48 = vpop.f32.mrf.mxu1 }
 0x308   :  { %v2244_v54 = vadd.f32 %v2243_v48, %v2231_v51  ;;  %v2395_v48 = vperm.slane %v4155_v63, 2  ;;  %v2398_v51 = vperm.slane %v4158_v25, 6  ;;  %v2390_v57 = vperm.slane %v2382_v47, 1 }
 0x30d   :  { %v2232_v59 = vpop.f32.mrf.mxu0 }
 0x30f   :  { %v2256_v55 = vpop.f32.mrf.mxu2  ;;  %v2245_v62 = vpop.f32.mrf.mxu1 }
 0x310   :  { %v2257_v58 = vadd.f32 %v2256_v55, %v2244_v54  ;;  %v2388_v54 = vperm.slane %v2380_v44, 1  ;;  %v2389_v55 = vperm.slane %v2381_v45, 1  ;;  %v2404_v62 = vperm.slane %v2396_v49, 2 }
 0x311   :  { %v2269_v56 = vpop.f32.mrf.mxu3 }
 0x312   :  { %v2270_v9 = vadd.f32 %v2269_v56, %v2257_v58  ;;  %v2403_v58 = vperm.slane %v2395_v48, 2 }
 0x314   :  { %v2346_v50 = vadd.f32 %v2345_v10, %v2270_v9  ;;  %v2406_v10 = vperm.slane %v2398_v51, 2 }
 0x316   :  { %2347 = vadd.xlane.f32.xlu1 %v2346_v50  ;;  %v4218_v50 = vld [vmem:[#allocation8] sm:$0x1f] }
 0x317   :  { %v2258_v11 = vpop.f32.mrf.mxu2  ;;  %v2431_v63 = vperm.slane %v4218_v50, 4 }
 0x319   :  { %v2271_v27 = vpop.f32.mrf.mxu3 }
 0x31a   :  { %v4222_v27 = vld [vmem:[#allocation8 + $0x8] sm:$0x1f] }
 0x31b   :  { %v2432_v32 = vperm.slane %v4222_v27, 4 }
 0x31e   :  { %2276 = vadd.xlane.f32.xlu1 %v2275_v35  ;;  %v2433_v35 = vperm.slane %v4225_v1, 4 }
 0x389   :  { %v2348_v3 = vpop.xlane.xlu1 %2347 }
 0x38a   :  { %v2349_v15 = vmul.f32 %v2348_v3, %v4063_v61  ;;  %v4228_v3 = vld [vmem:[#allocation8 + $0x18] sm:$0x1f] }
 0x38c   :  { %v4168_v4 = vsub.f32 %v2114_v5, %v2349_v15  ;;  %v4170_v16 = vsub.f32 %v2166_v52, %v2349_v15  ;;  %v4172_v17 = vsub.f32 %v2218_v53, %v2349_v15  ;;  %v4174_v6 = vsub.f32 %v2270_v9, %v2349_v15 }
 0x38d   :  { %v2387_v53 = vperm.slane %v2379_v42, 1  ;;  %v2434_v15 = vperm.slane %v4228_v3, 4 }
 0x38e   :  { %v2354_v22 = vmul.f32 %v4168_v4, %v4168_v4  ;;  %v2355_v7 = vmul.f32 %v4170_v16, %v4170_v16  ;;  %v2356_v8 = vmul.f32 %v4172_v17, %v4172_v17  ;;  %v2357_v18 = vmul.f32 %v4174_v6, %v4174_v6 }
 0x390   :  { %v2358_v13 = vadd.f32 %v2355_v7, %v2354_v22  ;;  %v2308_v22 = vperm.slane %v4127_v39, 1  ;;  %v2309_v7 = vperm.slane %v4127_v39, 5 }
 0x391   :  { %v2277_v14 = vpop.xlane.xlu1 %2276 }
 0x392   :  { %v2278_v5 = vmul.f32 %v2277_v14, %v4063_v61  ;;  %v2359_v19 = vadd.f32 %v2358_v13, %v2356_v8  ;;  %v2310_v14 = vperm.slane %v4137_v0, 1 }
 0x394   :  { %v4186_v20 = vsub.f32 %v4135_v26, %v2278_v5  ;;  %v4189_v21 = vsub.f32 %v4139_v2, %v2278_v5  ;;  %v2360_v23 = vadd.f32 %v2359_v19, %v2357_v18  ;;  %v4192_v33 = vsub.f32 %v4146_v12, %v2278_v5 }
 0x395   :  { %v4195_v34 = vsub.f32 %v4153_v60, %v2278_v5  ;;  %v2311_v5 = vperm.slane %v4137_v0, 5 }
 0x396   :  { %2361 = vadd.xlane.f32.xlu2 %v2360_v23  ;;  %v2283_v40 = vmul.f32 %v4186_v20, %v4186_v20  ;;  %v2284_v24 = vmul.f32 %v4189_v21, %v4189_v21  ;;  %v2285_v26 = vmul.f32 %v4192_v33, %v4192_v33 }
 0x397   :  { %v2286_v2 = vmul.f32 %v4195_v34, %v4195_v34 }
 0x398   :  { %v2287_v28 = vadd.f32 %v2284_v24, %v2283_v40 }
 0x39a   :  { %v2288_v43 = vadd.f32 %v2287_v28, %v2285_v26  ;;  %v2324_v26 = vperm.slane %v4127_v39, 2  ;;  %v2325_v28 = vperm.slane %v4127_v39, 6  ;;  %v2318_v39 = vperm.slane %v2310_v14, 1 }
 0x39c   :  { %v2289_v12 = vadd.f32 %v2288_v43, %v2286_v2  ;;  %v2326_v2 = vperm.slane %v4137_v0, 2  ;;  %v2332_v49 = vperm.slane %v2324_v26, 2 }
 0x39e   :  { %2290 = vadd.xlane.f32.xlu2 %v2289_v12 }
 0x409   :  { %v2362_v29 = vpop.xlane.xlu2 %2361 }
 0x40a   :  { %v2363_v60 = vmul.f32 %v2362_v29, %v4063_v61 }
 0x40c   :  { %v2364_v30 = vadd.f32 1e-05, %v2363_v60 }
 0x40e   :  { %3814 = vrsqrt.f32 %v2364_v30  ;;  %vm2371_vm6 = vweird.f32 %v2364_v30 }
 0x411   :  { %v2291_v31 = vpop.xlane.xlu2 %2290 }
 0x412   :  { %v2292_v36 = vmul.f32 %v2291_v31, %v4063_v61  ;;  %v2397_v61 = vperm.slane %v4158_v25, 2 }
 0x414   :  { %v3815_v37 = vpop.eup %3814  ;;  %v4207_v38 = vadd.f32 1e-05, %v2292_v36  ;;  %v2405_v9 = vperm.slane %v2397_v61, 2  ;;  %v2333_v61 = vperm.slane %v2325_v28, 2 }
 0x415   :  { %v2366_v41 = vmul.f32 %v3815_v37, %v2364_v30  ;;  %vm2372_vm5 = vweird.f32 %v3815_v37 }
 0x416   :  { %3816 = vrsqrt.f32 %v4207_v38  ;;  %vm2373_vm7 = vmor %vm2371_vm6, %vm2372_vm5  ;;  %vm2300_vm9 = vweird.f32 %v4207_v38 }
 0x417   :  { %v2367_v46 = vmul.f32 %v3815_v37, %v2366_v41  ;;  %v2317_v41 = vperm.slane %v2309_v7, 1 }
 0x419   :  { %v2368_v52 = vmul.f32 0.5, %v2367_v46  ;;  %v2319_v46 = vperm.slane %v2311_v5, 1  ;;  %v2418_v5 = vperm.slane %v4228_v3, 3 }
 0x41b   :  { %v2369_v56 = vsub.f32 1.5, %v2368_v52 }
 0x41c   :  { %v3817_v59 = vpop.eup %3816 }
 0x41d   :  { %v2370_v11 = vmul.f32 %v3815_v37, %v2369_v56  ;;  %v2295_v25 = vmul.f32 %v3817_v59, %v4207_v38  ;;  %vm2301_vm8 = vweird.f32 %v3817_v59 }
 0x41e   :  { %vm2302_vm10 = vmor %vm2300_vm9, %vm2301_vm8 }
 0x41f   :  { %v2374_v8 = vsel %vm2373_vm7, %v3815_v37, %v2370_v11  ;;  %v2296_v13 = vmul.f32 %v3817_v59, %v2295_v25  ;;  %v2415_v11 = vperm.slane %v4218_v50, 3 }
 0x420   :  { %v2375_v18 = vmul.f32 %v2374_v8, %v4168_v4  ;;  %v2376_v19 = vmul.f32 %v2374_v8, %v4170_v16  ;;  %v2377_v23 = vmul.f32 %v2374_v8, %v4172_v17  ;;  %v2378_v40 = vmul.f32 %v2374_v8, %v4174_v6 }
 0x421   :  { %v2297_v24 = vmul.f32 0.5, %v2296_v13  ;;  %v2316_v4 = vperm.slane %v2308_v22, 1  ;;  %v2327_v16 = vperm.slane %v4137_v0, 6 }
 0x422   :  { %v2391_v43 = vmul.f32 %v2387_v53, %v2375_v18  ;;  %v2392_v12 = vmul.f32 %v2388_v54, %v2376_v19  ;;  %v2393_v29 = vmul.f32 %v2389_v55, %v2377_v23  ;;  %v2394_v60 = vmul.f32 %v2390_v57, %v2378_v40 }
 0x423   :  { %v2298_v30 = vsub.f32 1.5, %v2297_v24  ;;  %v2334_v55 = vperm.slane %v2326_v2, 2  ;;  %v2335_v56 = vperm.slane %v2327_v16, 2  ;;  %v2445_v24 = vstv %s3534_s4 }
 0x424   :  { %v2407_v31 = vadd.f32 %v2403_v58, %v2391_v43  ;;  %v2408_v17 = vadd.f32 %v2404_v62, %v2392_v12  ;;  %v2409_v36 = vadd.f32 %v2405_v9, %v2393_v29  ;;  %v2410_v6 = vadd.f32 %v2406_v10, %v2394_v60 }
 0x425   :  { %v2299_v37 = vmul.f32 %v3817_v59, %v2298_v30  ;;  %v2429_v43 = vstv %s2428_s5 }
 0x426   :  { %v2411_v42 = vmax.f32 %v2407_v31, 0.0  ;;  %v2412_v44 = vmax.f32 %v2408_v17, 0.0  ;;  %v2413_v45 = vmax.f32 %v2409_v36, 0.0  ;;  %v2414_v48 = vmax.f32 %v2410_v6, 0.0 }
 0x427   :  { %v2303_v47 = vsel %vm2302_vm10, %v3817_v59, %v2299_v37 }
 0x428   :  { %v2304_v0 = vmul.f32 %v2303_v47, %v4186_v20  ;;  %v2305_v51 = vmul.f32 %v2303_v47, %v4189_v21  ;;  %v2435_v52 = vmul.f32 %v2431_v63, %v2411_v42  ;;  %v2436_v53 = vmul.f32 %v2432_v32, %v2412_v44 }
 0x429   :  { %v2306_v54 = vmul.f32 %v2303_v47, %v4192_v33  ;;  %v2307_v38 = vmul.f32 %v2303_v47, %v4195_v34  ;;  %v2437_v57 = vmul.f32 %v2433_v35, %v2413_v45  ;;  %v2416_v20 = vperm.slane %v4222_v27, 3 }
 0x42a   :  { %v2439_v58 = vadd.f32 %v2436_v53, %v2435_v52  ;;  %v2320_v62 = vmul.f32 %v2316_v4, %v2304_v0  ;;  %v2321_v9 = vmul.f32 %v2317_v41, %v2305_v51  ;;  %v2438_v25 = vmul.f32 %v2434_v15, %v2414_v48 }
 0x42b   :  { %v2322_v59 = vmul.f32 %v2318_v39, %v2306_v54  ;;  %v2323_v10 = vmul.f32 %v2319_v46, %v2307_v38  ;;  %v2417_v35 = vperm.slane %v4225_v1, 3 }
 0x42c   :  { %v2440_v21 = vadd.f32 %v2439_v58, %v2437_v57  ;;  %v2336_v63 = vadd.f32 %v2332_v49, %v2320_v62  ;;  %v2337_v32 = vadd.f32 %v2333_v61, %v2321_v9 }
 0x42d   :  { %v2338_v22 = vadd.f32 %v2334_v55, %v2322_v59  ;;  %v2339_v33 = vadd.f32 %v2335_v56, %v2323_v10 }
 0x42e   :  { %v2441_v7 = vadd.f32 %v2440_v21, %v2438_v25  ;;  %v2340_v34 = vmax.f32 %v2336_v63, 0.0  ;;  %v2341_v8 = vmax.f32 %v2337_v32, 0.0 }
 0x42f   :  { %v2342_v13 = vmax.f32 %v2338_v22, 0.0  ;;  %v2343_v14 = vmax.f32 %v2339_v33, 0.0 }
 0x430   :  { %2442 = vadd.xlane.f32.xlu0 %v2441_v7  ;;  %v2419_v18 = vmul.f32 %v2415_v11, %v2340_v34  ;;  %v2420_v50 = vmul.f32 %v2416_v20, %v2341_v8 }
 0x431   :  { %v2421_v19 = vmul.f32 %v2417_v35, %v2342_v13  ;;  %v2422_v15 = vmul.f32 %v2418_v5, %v2343_v14 }
 0x432   :  { %v2423_v27 = vadd.f32 %v2420_v50, %v2419_v18 }
 0x434   :  { %v2424_v23 = vadd.f32 %v2423_v27, %v2421_v19 }
 0x436   :  { %v2425_v40 = vadd.f32 %v2424_v23, %v2422_v15 }
 0x438   :  { %2426 = vadd.xlane.f32.xlu1 %v2425_v40 }
 0x4a3   :  { %v2443_v26 = vpop.xlane.xlu0 %2442 }
 0x4a4   :  { %v2446_v28 = vadd.f32 %v2445_v24, %v2443_v26 }
 0x4a6   :  { %v2451_v2 = vmin.f32 %v2446_v28, 20.0  ;;  %vm2450_vm14 = vcmp.gt.f32.partialorder %v2446_v28, 20.0 }
 0x4a8   :  { %v2452_v1 = vmul.f32 1.442695, %v2451_v2 }
 0x4aa   :  { %3818 = vpow2.f32 %v2452_v1 }
 0x4ab   :  { %v2427_v12 = vpop.xlane.xlu1 %2426 }
 0x4ac   :  { %v2430_v29 = vadd.f32 %v2429_v43, %v2427_v12 }
 0x4ae   :  { %3820 = vtanh.f32 %v2430_v29 }
 0x4b0   :  { %v3819_v3 = vpop.eup %3818 }
 0x4b1   :  { %v2454_v60 = vadd.f32 1.0, %v3819_v3  ;;  %v2457_v30 = vmul.f32 -0.5, %v3819_v3  ;;  %v2460_v31 = vand.u32 2147483647, %v3819_v3 }
 0x4b3   :  { %3822 = vlog2.f32 %v2454_v60  ;;  %v2458_v16 = vadd.f32 1.0, %v2457_v30  ;;  %vm2461_vm12 = vcmp.lt.f32.partialorder %v2460_v31, 0.0004427343 }
 0x4b4   :  { %v3821_v4 = vpop.eup %3820 }
 0x4b5   :  { %2449 = vst.msk [vmem:[%s4264_s6] sm:$0xff] %vm2448_vm11, %v3821_v4  ;;  %v2459_v6 = vmul.f32 %v3819_v3, %v2458_v16 }
 0x4b9   :  { %v3823_v17 = vpop.eup %3822 }
 0x4ba   :  { %v2456_v36 = vmul.f32 0.6931472, %v3823_v17 }
 0x4bc   :  { %v2462_v37 = vsel %vm2461_vm12, %v2459_v6, %v2456_v36 }
 0x4bd   :  { %v2463_v41 = vsel %vm2450_vm14, %v2446_v28, %v2462_v37 }
 0x4be   :  { %2465 = vst.msk [vmem:[%s4264_s6] sm:$0xff] %vm2464_vm13, %v2463_v41 }
 0x4bf   :  { %2470 = vsyncpa [#allocation3], 1 }
 0x4c0   :  { %2471 = vsyncpa [#allocation6], 1 }
 0x4c1   :  { %2472 = vsyncpa [#allocation9], 1 }
 0x4c2   :  { %2473 = vsyncpa [#allocation4], 1 }

</bundles_post_ra>
